<compile_context>
chip_gen: v7x
topology: tpu7x:2x2x1
jax: 0.10.0
libtpu: 0.0.40
codegen_flags: <defaults>
</compile_context>

<pallas_src>
import functools

import jax
import jax.numpy as jnp
from jax.experimental import pallas as pl
from jax.experimental.pallas import tpu as pltpu


# ------------------------- Pallas kernel -------------------------

def _mlp_kernel(x_ref, *refs, num_layers, d_in, rank1_first, reduce_last):
    """Fused MLP forward over one batch tile.

    refs = (w_0, b_0, w_1, b_1, ..., w_{L-1}, b_{L-1}, out_ref)
    tanh after every layer except the last.

    If rank1_first: w_0 is (d_in, H_p) and layer 0 is evaluated as a sum of
    rank-1 products on the VPU (d_in is tiny, e.g. 2; the MXU would be idle).
    If reduce_last: w_{L-1} is stored TRANSPOSED as (1, H_p) and the last layer
    is an elementwise multiply + cross-lane sum producing a (TB, 1) output.
    """
    out_ref = refs[-1]
    params = refs[:-1]

    x = x_ref[...].astype(jnp.float32)

    # ---- layer 0 ----
    w0 = params[0][...].astype(jnp.float32)
    b0 = params[1][...].astype(jnp.float32)
    if rank1_first:
        z = x[:, 0:1] * w0[0:1, :]                      # (TB,1)*(1,H_p) -> (TB,H_p)
        for j in range(1, d_in):
            z = z + x[:, j:j + 1] * w0[j:j + 1, :]
        z = z + b0
    else:
        z = jnp.dot(x, w0, preferred_element_type=jnp.float32) + b0
    a = jnp.tanh(z) if num_layers > 1 else z

    # ---- hidden layers 1 .. L-2 (MXU) ----
    for li in range(1, num_layers - 1):
        w = params[2 * li][...].astype(jnp.float32)
        b = params[2 * li + 1][...].astype(jnp.float32)
        a = jnp.tanh(jnp.dot(a, w, preferred_element_type=jnp.float32) + b)

    # ---- last layer (no activation) ----
    if num_layers > 1:
        wl = params[2 * (num_layers - 1)][...].astype(jnp.float32)
        bl = params[2 * (num_layers - 1) + 1][...].astype(jnp.float32)
        if reduce_last:
            # wl is (1, H_p) (transposed); lane-reduce -> (TB, 1)
            a = jnp.sum(a * wl, axis=-1, keepdims=True) + bl
        else:
            a = jnp.dot(a, wl, preferred_element_type=jnp.float32) + bl

    out_ref[...] = a.astype(out_ref.dtype)


# ------------------------- parameter preparation (done ONCE) -------------------------

def _pad_to(n, m):
    return ((n + m - 1) // m) * m


def prepare_params(weights, biases):
    """Zero-pad parameters to TPU-friendly shapes once, outside the training loop.

    weights[i]: (d_i, d_{i+1}) f32;  biases[i]: (d_{i+1},) f32.
    Hidden dims are padded to multiples of 128 (zero rows/cols + zero bias keep
    padded lanes inert: tanh(0)=0).  The input dim is left unpadded when small
    (rank-1 path) and the 1-wide output weight is stored transposed (1, H_p).
    """
    num_layers = len(weights)
    assert num_layers >= 2, "PINN Net always has at least 2 linear layers"
    dims = [weights[0].shape[0]] + [w.shape[1] for w in weights]
    d_in, d_out = dims[0], dims[-1]

    rank1_first = d_in <= 8
    reduce_last = d_out == 1

    dims_p = list(dims)
    dims_p[0] = d_in if rank1_first else _pad_to(d_in, 128)
    for i in range(1, num_layers):
        dims_p[i] = _pad_to(dims[i], 128)
    dims_p[-1] = 1 if reduce_last else _pad_to(d_out, 128)

    padded = []
    for li in range(num_layers):
        w = jnp.asarray(weights[li], jnp.float32)
        b = jnp.asarray(biases[li], jnp.float32)
        din_p, dout_p = dims_p[li], dims_p[li + 1]
        if li == num_layers - 1 and reduce_last:
            # store transposed: (1, H_p_prev)
            w_p = jnp.zeros((1, din_p), jnp.float32).at[0, : w.shape[0]].set(w[:, 0])
            b_p = jnp.reshape(b, (1, 1))
        else:
            w_p = jnp.zeros((din_p, dout_p), jnp.float32).at[: w.shape[0], : w.shape[1]].set(w)
            b_p = jnp.zeros((1, dout_p), jnp.float32).at[0, : b.shape[0]].set(b)
        padded += [w_p, b_p]

    meta = dict(num_layers=num_layers, dims=tuple(dims), dims_p=tuple(dims_p),
                rank1_first=rank1_first, reduce_last=reduce_last)
    return padded, meta


# ------------------------- forward wrapper -------------------------

def mlp_forward_pallas(x, padded_params, *, meta, batch_tile=512):
    """x: (N, d_in) f32. padded_params/meta from prepare_params()."""
    num_layers = meta["num_layers"]
    dims, dims_p = meta["dims"], meta["dims_p"]
    N, d_in = x.shape
    assert d_in == dims[0]

    # Clamp the tile to the (8-aligned) batch so tiny batches don't over-pad;
    # keep it a multiple of 8 for sublane alignment.
    bt = max(8, min(_pad_to(batch_tile, 8), _pad_to(N, 8)))
    N_p = _pad_to(N, bt)

    d_in_p = dims_p[0]
    if d_in_p == d_in:
        x_p = x if N_p == N else jnp.pad(x, ((0, N_p - N), (0, 0)))
    else:
        x_p = jnp.zeros((N_p, d_in_p), jnp.float32).at[:N, :d_in].set(x)

    grid = (N_p // bt,)

    in_specs = [pl.BlockSpec((bt, d_in_p), lambda i: (i, 0))]
    for li in range(num_layers):
        w_p = padded_params[2 * li]
        b_p = padded_params[2 * li + 1]
        # Full (padded) weight / bias resident in VMEM at every grid step
        # (constant index_map -> no re-DMA across steps).
        in_specs.append(pl.BlockSpec(w_p.shape, lambda i: (0, 0)))
        in_specs.append(pl.BlockSpec(b_p.shape, lambda i: (0, 0)))

    out_spec = pl.BlockSpec((bt, dims_p[-1]), lambda i: (i, 0))

    kernel = functools.partial(
        _mlp_kernel,
        num_layers=num_layers,
        d_in=d_in,
        rank1_first=meta["rank1_first"],
        reduce_last=meta["reduce_last"],
    )

    out_p = pl.pallas_call(
        kernel,
        out_shape=jax.ShapeDtypeStruct((N_p, dims_p[-1]), jnp.float32),
        grid_spec=pltpu.PrefetchScalarGridSpec(
            num_scalar_prefetch=0,
            grid=grid,
            in_specs=in_specs,
            out_specs=out_spec,
        ),
        compiler_params=pltpu.CompilerParams(
            dimension_semantics=("parallel",)),
        # VMEM footprint at bt<=2048 is well under the default scoped limit even
        # on v7x (64 MiB physical); set vmem_limit_bytes here if bt is pushed
        # past ~8k rows.
    )(x_p, *padded_params)

    return out_p[:N, : dims[-1]]


# ------------------------- parameter init (Xavier-normal, zero bias) -------------------------

def init_params(layers, key):
    weights, biases = [], []
    for i in range(len(layers) - 1):
        key, sub = jax.random.split(key)
        fan_in, fan_out = layers[i], layers[i + 1]
        std = (2.0 / (fan_in + fan_out)) ** 0.5  # xavier_normal_, gain=1.0
        w = std * jax.random.normal(sub, (fan_in, fan_out), jnp.float32)
        b = jnp.zeros((fan_out,), jnp.float32)
        weights.append(w)
        biases.append(b)
    return weights, biases


def mlp_forward_ref(x, weights, biases):
    hi = jax.lax.Precision.HIGHEST
    a = jnp.tanh(jnp.dot(x, weights[0], precision=hi) + biases[0])
    for i in range(1, len(weights) - 1):
        a = jnp.tanh(jnp.dot(a, weights[i], precision=hi) + biases[i])
    return jnp.dot(a, weights[-1], precision=hi) + biases[-1]


if __name__ == "__main__":
    # 2D Allen-Cahn PINN config: input (x, t) -> scalar u.  Batch kept small for
    # the smoke test; batch_tile=256 still gives a 2-step parallel grid (both
    # v7x TensorCores active) and exercises the batch-padding path.
    layers = [2, 64, 64, 64, 1]
    batch = 300
    batch_tile = 256

    key = jax.random.PRNGKey(0)
    key, kx = jax.random.split(key)
    x = jax.random.uniform(kx, (batch, layers[0]), jnp.float32, -1.0, 1.0)

    weights, biases = init_params(layers, key)

    # Padding is done exactly once, outside the (hypothetical) training loop.
    padded_params, meta = prepare_params(weights, biases)

    fwd = jax.jit(functools.partial(mlp_forward_pallas, meta=meta,
                                    batch_tile=batch_tile))
    out = jax.block_until_ready(fwd(x, padded_params))

    # Sanity check against plain-JAX reference.
    ref = mlp_forward_ref(x, weights, biases)
    assert out.shape == (batch, layers[-1])
    assert jnp.allclose(out, ref, atol=1e-5, rtol=1e-5)

    print("KERNEL_OK")
</pallas_src>

<mosaic_0001>
module attributes {stable_mosaic.version = 11 : i64} {
  func.func @_mlp_kernel(%arg0: i32, %arg1: memref<256x2xf32, #tpu.memory_space<vmem>>, %arg2: memref<2x128xf32, #tpu.memory_space<vmem>>, %arg3: memref<1x128xf32, #tpu.memory_space<vmem>>, %arg4: memref<128x128xf32, #tpu.memory_space<vmem>>, %arg5: memref<1x128xf32, #tpu.memory_space<vmem>>, %arg6: memref<128x128xf32, #tpu.memory_space<vmem>>, %arg7: memref<1x128xf32, #tpu.memory_space<vmem>>, %arg8: memref<1x128xf32, #tpu.memory_space<vmem>>, %arg9: memref<1x1xf32, #tpu.memory_space<vmem>>, %arg10: memref<256x1xf32, #tpu.memory_space<vmem>>) attributes {dimension_semantics = [#tpu.dimension_semantics<parallel>], iteration_bounds = array<i64: 2>, scalar_prefetch = 0 : i64, scratch_operands = 0 : i64, tpu.core_type = #tpu.core_type<tc>, window_params = [{transform_indices = @transform_0, window_bounds = array<i64: 256, 2>}, {pipeline_mode = #tpu.pipeline_mode<synchronous>, transform_indices = @transform_1, window_bounds = array<i64: 2, 128>}, {pipeline_mode = #tpu.pipeline_mode<synchronous>, transform_indices = @transform_2, window_bounds = array<i64: 1, 128>}, {pipeline_mode = #tpu.pipeline_mode<synchronous>, transform_indices = @transform_3, window_bounds = array<i64: 128, 128>}, {pipeline_mode = #tpu.pipeline_mode<synchronous>, transform_indices = @transform_4, window_bounds = array<i64: 1, 128>}, {pipeline_mode = #tpu.pipeline_mode<synchronous>, transform_indices = @transform_5, window_bounds = array<i64: 128, 128>}, {pipeline_mode = #tpu.pipeline_mode<synchronous>, transform_indices = @transform_6, window_bounds = array<i64: 1, 128>}, {pipeline_mode = #tpu.pipeline_mode<synchronous>, transform_indices = @transform_7, window_bounds = array<i64: 1, 128>}, {pipeline_mode = #tpu.pipeline_mode<synchronous>, transform_indices = @transform_8, window_bounds = array<i64: 1, 1>}, {transform_indices = @transform_9, window_bounds = array<i64: 256, 1>}]} {
    %c0 = arith.constant 0 : index
    %c0_0 = arith.constant 0 : index
    %0 = vector.load %arg1[%c0, %c0_0] : memref<256x2xf32, #tpu.memory_space<vmem>>, vector<256x2xf32>
    %c0_1 = arith.constant 0 : index
    %c0_2 = arith.constant 0 : index
    %1 = vector.load %arg2[%c0_1, %c0_2] : memref<2x128xf32, #tpu.memory_space<vmem>>, vector<2x128xf32>
    %c0_3 = arith.constant 0 : index
    %c0_4 = arith.constant 0 : index
    %2 = vector.load %arg3[%c0_3, %c0_4] : memref<1x128xf32, #tpu.memory_space<vmem>>, vector<1x128xf32>
    %3 = vector.extract_strided_slice %0 {offsets = [0, 0], sizes = [256, 1], strides = [1, 1]} : vector<256x2xf32> to vector<256x1xf32>
    %4 = vector.extract_strided_slice %1 {offsets = [0, 0], sizes = [1, 128], strides = [1, 1]} : vector<2x128xf32> to vector<1x128xf32>
    %5 = vector.broadcast %3 : vector<256x1xf32> to vector<256x128xf32>
    %6 = vector.broadcast %4 : vector<1x128xf32> to vector<256x128xf32>
    %7 = arith.mulf %5, %6 : vector<256x128xf32>
    %8 = vector.extract_strided_slice %0 {offsets = [0, 1], sizes = [256, 1], strides = [1, 1]} : vector<256x2xf32> to vector<256x1xf32>
    %9 = vector.extract_strided_slice %1 {offsets = [1, 0], sizes = [1, 128], strides = [1, 1]} : vector<2x128xf32> to vector<1x128xf32>
    %10 = vector.broadcast %8 : vector<256x1xf32> to vector<256x128xf32>
    %11 = vector.broadcast %9 : vector<1x128xf32> to vector<256x128xf32>
    %12 = arith.mulf %10, %11 : vector<256x128xf32>
    %13 = arith.addf %7, %12 : vector<256x128xf32>
    %14 = vector.broadcast %2 : vector<1x128xf32> to vector<256x128xf32>
    %15 = arith.addf %13, %14 : vector<256x128xf32>
    %16 = math.tanh %15 : vector<256x128xf32>
    %c0_5 = arith.constant 0 : index
    %c0_6 = arith.constant 0 : index
    %17 = vector.load %arg4[%c0_5, %c0_6] : memref<128x128xf32, #tpu.memory_space<vmem>>, vector<128x128xf32>
    %c0_7 = arith.constant 0 : index
    %c0_8 = arith.constant 0 : index
    %18 = vector.load %arg5[%c0_7, %c0_8] : memref<1x128xf32, #tpu.memory_space<vmem>>, vector<1x128xf32>
    %cst = arith.constant dense<0.000000e+00> : vector<256x128xf32>
    %19 = tpu.matmul %16, %17, %cst {dimension_numbers = #tpu.dot_dimension_numbers<[1], [0], [0], [1], [0, 0, 1, 1], [], []>} : vector<256x128xf32>, vector<128x128xf32>, vector<256x128xf32> -> vector<256x128xf32>
    %20 = vector.broadcast %18 : vector<1x128xf32> to vector<256x128xf32>
    %21 = arith.addf %19, %20 : vector<256x128xf32>
    %22 = math.tanh %21 : vector<256x128xf32>
    %c0_9 = arith.constant 0 : index
    %c0_10 = arith.constant 0 : index
    %23 = vector.load %arg6[%c0_9, %c0_10] : memref<128x128xf32, #tpu.memory_space<vmem>>, vector<128x128xf32>
    %c0_11 = arith.constant 0 : index
    %c0_12 = arith.constant 0 : index
    %24 = vector.load %arg7[%c0_11, %c0_12] : memref<1x128xf32, #tpu.memory_space<vmem>>, vector<1x128xf32>
    %cst_13 = arith.constant dense<0.000000e+00> : vector<256x128xf32>
    %25 = tpu.matmul %22, %23, %cst_13 {dimension_numbers = #tpu.dot_dimension_numbers<[1], [0], [0], [1], [0, 0, 1, 1], [], []>} : vector<256x128xf32>, vector<128x128xf32>, vector<256x128xf32> -> vector<256x128xf32>
    %26 = vector.broadcast %24 : vector<1x128xf32> to vector<256x128xf32>
    %27 = arith.addf %25, %26 : vector<256x128xf32>
    %28 = math.tanh %27 : vector<256x128xf32>
    %c0_14 = arith.constant 0 : index
    %c0_15 = arith.constant 0 : index
    %29 = vector.load %arg8[%c0_14, %c0_15] : memref<1x128xf32, #tpu.memory_space<vmem>>, vector<1x128xf32>
    %c0_16 = arith.constant 0 : index
    %c0_17 = arith.constant 0 : index
    %30 = vector.load %arg9[%c0_16, %c0_17] : memref<1x1xf32, #tpu.memory_space<vmem>>, vector<1x1xf32>
    %31 = vector.broadcast %29 : vector<1x128xf32> to vector<256x128xf32>
    %32 = arith.mulf %28, %31 : vector<256x128xf32>
    %cst_18 = arith.constant dense<0.000000e+00> : vector<256xf32>
    %33 = vector.multi_reduction <add>, %32, %cst_18 [1] : vector<256x128xf32> to vector<256xf32>
    %34 = vector.shape_cast %33 : vector<256xf32> to vector<256x1xf32>
    %35 = vector.broadcast %30 : vector<1x1xf32> to vector<256x1xf32>
    %36 = arith.addf %34, %35 : vector<256x1xf32>
    %c0_19 = arith.constant 0 : index
    %c0_20 = arith.constant 0 : index
    %37 = vector.load %arg10[%c0_19, %c0_20] : memref<256x1xf32, #tpu.memory_space<vmem>>, vector<256x1xf32>
    tpu.vector_store %arg10[%c0_19, %c0_20], %36 {strides = array<i32>} : memref<256x1xf32, #tpu.memory_space<vmem>>, vector<256x1xf32>,
    return
  }
  func.func @transform_0(%arg0: i32) -> (i32, i32) {
    %c0_i32 = arith.constant 0 : i32
    %c0_i32_0 = arith.constant 0 : i32
    return %arg0, %c0_i32 : i32, i32
  }
  func.func @transform_1(%arg0: i32) -> (i32, i32) {
    %c0_i32 = arith.constant 0 : i32
    %c0_i32_0 = arith.constant 0 : i32
    %c0_i32_1 = arith.constant 0 : i32
    return %c0_i32, %c0_i32_0 : i32, i32
  }
  func.func @transform_2(%arg0: i32) -> (i32, i32) {
    %c0_i32 = arith.constant 0 : i32
    %c0_i32_0 = arith.constant 0 : i32
    %c0_i32_1 = arith.constant 0 : i32
    return %c0_i32, %c0_i32_0 : i32, i32
  }
  func.func @transform_3(%arg0: i32) -> (i32, i32) {
    %c0_i32 = arith.constant 0 : i32
    %c0_i32_0 = arith.constant 0 : i32
    %c0_i32_1 = arith.constant 0 : i32
    return %c0_i32, %c0_i32_0 : i32, i32
  }
  func.func @transform_4(%arg0: i32) -> (i32, i32) {
    %c0_i32 = arith.constant 0 : i32
    %c0_i32_0 = arith.constant 0 : i32
    %c0_i32_1 = arith.constant 0 : i32
    return %c0_i32, %c0_i32_0 : i32, i32
  }
  func.func @transform_5(%arg0: i32) -> (i32, i32) {
    %c0_i32 = arith.constant 0 : i32
    %c0_i32_0 = arith.constant 0 : i32
    %c0_i32_1 = arith.constant 0 : i32
    return %c0_i32, %c0_i32_0 : i32, i32
  }
  func.func @transform_6(%arg0: i32) -> (i32, i32) {
    %c0_i32 = arith.constant 0 : i32
    %c0_i32_0 = arith.constant 0 : i32
    %c0_i32_1 = arith.constant 0 : i32
    return %c0_i32, %c0_i32_0 : i32, i32
  }
  func.func @transform_7(%arg0: i32) -> (i32, i32) {
    %c0_i32 = arith.constant 0 : i32
    %c0_i32_0 = arith.constant 0 : i32
    %c0_i32_1 = arith.constant 0 : i32
    return %c0_i32, %c0_i32_0 : i32, i32
  }
  func.func @transform_8(%arg0: i32) -> (i32, i32) {
    %c0_i32 = arith.constant 0 : i32
    %c0_i32_0 = arith.constant 0 : i32
    %c0_i32_1 = arith.constant 0 : i32
    return %c0_i32, %c0_i32_0 : i32, i32
  }
  func.func @transform_9(%arg0: i32) -> (i32, i32) {
    %c0_i32 = arith.constant 0 : i32
    %c0_i32_0 = arith.constant 0 : i32
    return %arg0, %c0_i32 : i32, i32
  }
}

</mosaic_0001>

<bundles_post_ra>
// kernel: mlp_forward_pallas.1
= control target key start
LH: loop header
LB: loop body
LE: loop exit
PB: predicated region body
PF: predicated region fallthrough
CT: control target
= control target key end

     0   :  { %s2231_s11 = smov 0   ;;  %s2704_s0 = inlined_call_operand.vmem [shape: f32[512,2], index: 0, kind: input, shape index: {}]   ;;  %s2705_s1 = inlined_call_operand.vmem [shape: f32[2,128], index: 1, kind: input, shape index: {}]   ;;  %s2706_s2 = inlined_call_operand.vmem [shape: f32[1,128], index: 2, kind: input, shape index: {}]   ;;  %s2707_s3 = inlined_call_operand.vmem [shape: f32[128,128], index: 3, kind: input, shape index: {}]   ;;  %s2708_s4 = inlined_call_operand.vmem [shape: f32[1,128], index: 4, kind: input, shape index: {}]   ;;  %s2709_s5 = inlined_call_operand.vmem [shape: f32[128,128], index: 5, kind: input, shape index: {}]   ;;  %s2710_s6 = inlined_call_operand.vmem [shape: f32[1,128], index: 6, kind: input, shape index: {}]   ;;  %s2711_s7 = inlined_call_operand.vmem [shape: f32[1,128], index: 7, kind: input, shape index: {}]   ;;  %s2712_s8 = inlined_call_operand.<no memory space> [shape: f32[1,1], index: 8, kind: input, shape index: {}]   ;;  %s2713_s9 = inlined_call_operand.vmem [shape: f32[512,1], index: 9, kind: output, shape index: {}]  }
   0x1   :  { %v14_v0 = vstv %s2712_s8 }
   0x2   :  { %15 = vst [vmem:[#allocation2] sm:$0x1] %v14_v0 }
   0x3 LB: > { %s1625_s12 = sadd.s32 4294967295, %s2174_s11   ;;  %p1629_p0 = scmp.ge.s32.totalorder %s2174_s11, 1  ;;  %s2174_s11 = sphi %s2231_s11, %s21_s11  }
   0x4   : > { %p290_p1 = scmp.lt.s32.totalorder %s2174_s11, 3 }
   0x6   : > { %p291_p2 = pnand %p1629_p0, %p290_p1 }
   0x7   : > { %s1630_s13 = sshll.u32 (!%p291_p2), %s1625_s12, 5  ;;  %v834_v1 = vld [vmem:[%s2707_s3] sm:$0xff] (!%p291_p2)  ;;  %v835_v2 = vld [vmem:[%s2707_s3 + $0x8] sm:$0xff] (!%p291_p2)  ;;  %v836_v3 = vld [vmem:[%s2707_s3 + $0x10] sm:$0xff] (!%p291_p2)  ;;  %v2176_v4 = vmov (!%p291_p2), 0   ;;  %v2177_v13 = vmov (!%p291_p2), 1   ;;  %v532_v57 = vlaneseq (!%p291_p2) }
   0x8   : > { %294 = sbr.rel (%p291_p2) target bundleno = 890 (0x37a), region = 56  ;;  %1973 = vset.pattern.permute.xlu1 (!%p291_p2), %v2176_v4  ;;  %1971 = vset.pattern.permute.xlu0 (!%p291_p2), %v2176_v4  ;;  %p327_p3 = scmp.lt.s32.totalorder (!%p291_p2), %s1630_s13, 63  ;;  %v1897_v5 = vpack.c.bf16 (!%p291_p2), %v835_v2, %v834_v1  ;;  %v837_v6 = vld [vmem:[%s2707_s3 + $0x18] sm:$0xff] (!%p291_p2)  ;;  %v838_v8 = vld [vmem:[%s2707_s3 + $0x20] sm:$0xff] (!%p291_p2)  ;;  %v839_v9 = vld [vmem:[%s2707_s3 + $0x28] sm:$0xff] (!%p291_p2)  ;;  %vm1536_vm0 = vcmask (!%p291_p2), 7168  }
   0x9   : > { %v1901_v7 = vpack.c.bf16 (!%p291_p2), %v837_v6, %v836_v3  ;;  %v1905_v10 = vpack.c.bf16 (!%p291_p2), %v839_v9, %v838_v8  ;;  %v840_v15 = vld [vmem:[%s2707_s3 + $0x30] sm:$0xff] (!%p291_p2)  ;;  %v841_v17 = vld [vmem:[%s2707_s3 + $0x38] sm:$0xff] (!%p291_p2)  ;;  %v842_v18 = vld [vmem:[%s2707_s3 + $0x40] sm:$0xff] (!%p291_p2)  ;;  %v533_v59 = vshrl.u32 (!%p291_p2), %v532_v57, 7 }
   0xa   : > { %1898 = vmatprep.subr.bf16.mxu0 (!%p291_p2), %v1897_v5  ;;  %v1909_v19 = vpack.c.bf16 (!%p291_p2), %v841_v17, %v840_v15  ;;  %v843_v20 = vld [vmem:[%s2707_s3 + $0x48] sm:$0xff] (!%p291_p2)  ;;  %v844_v22 = vld [vmem:[%s2707_s3 + $0x50] sm:$0xff] (!%p291_p2)  ;;  %v845_v23 = vld [vmem:[%s2707_s3 + $0x58] sm:$0xff] (!%p291_p2) }
   0xb   : > { %1900 = vmatpush3.bf16.msra.mxu0 (!%p291_p2), %v1897_v5  ;;  %v1913_v21 = vpack.c.bf16 (!%p291_p2), %v843_v20, %v842_v18  ;;  %v1917_v25 = vpack.c.bf16 (!%p291_p2), %v845_v23, %v844_v22  ;;  %v846_v26 = vld [vmem:[%s2707_s3 + $0x60] sm:$0xff] (!%p291_p2)  ;;  %v847_v27 = vld [vmem:[%s2707_s3 + $0x68] sm:$0xff] (!%p291_p2)  ;;  %v848_v30 = vld [vmem:[%s2707_s3 + $0x70] sm:$0xff] (!%p291_p2)  ;;  %v534_v61 = vsub.s32 (!%p291_p2), 0, %v533_v59  ;;  %v698_v62 = vsub.s32 (!%p291_p2), 1, %v533_v59 }
   0xc   : > { %1902 = vmatprep.subr.bf16.mxu0 (!%p291_p2), %v1901_v7  ;;  %v1921_v29 = vpack.c.bf16 (!%p291_p2), %v847_v27, %v846_v26  ;;  %v849_v31 = vld [vmem:[%s2707_s3 + $0x78] sm:$0xff] (!%p291_p2)  ;;  %v370_v63 = vld [vmem:[%s2705_s1] sm:$0x3] (!%p291_p2)  ;;  %v1115_v26 = vld [vmem:[%s2709_s5 + $0x8] sm:$0xff] (!%p291_p2) }
   0xd   : > { %v1925_v33 = vpack.c.bf16 (!%p291_p2), %v849_v31, %v848_v30  ;;  %v2332_v2 = vrot.slane (!%p291_p2), %v370_v63, %v534_v61  ;;  %v2334_v3 = vrot.slane (!%p291_p2), %v370_v63, %v698_v62  ;;  %v1116_v27 = vld [vmem:[%s2709_s5 + $0x10] sm:$0xff] (!%p291_p2)  ;;  %v1117_v31 = vld [vmem:[%s2709_s5 + $0x18] sm:$0xff] (!%p291_p2) }
   0xf   : > { %s2715_s13 = smov (!%p327_p3, %s1630_s13), 63  ;;  %1904 = vmatpush3.bf16.msra.mxu0 %v1901_v7 }
  0x10   : > { %s1631_s25 = sshll.u32 %s2715_s13, 3  ;;  %1906 = vmatprep.subr.bf16.mxu0 %v1905_v10 }
  0x11   : > { %s2265_s28 = scalar_lea.vmem %s2704_s0, %s1631_s25  ;;  %s2603_s16 = scalar_lea.vmem %s2713_s9, %s1631_s25 }
  0x12   : > { %v339_v11 = vld [vmem:[%s2265_s28 + $0x8] sm:$0xff]  ;;  %v338_v12 = vld [vmem:[%s2265_s28] sm:$0xff]  ;;  %v340_v14 = vld [vmem:[%s2265_s28 + $0x10] sm:$0xff] }
  0x13   : > { %379 = vperm.xlu1 %1973, %v339_v11   ;;  %374 = vperm.xlu0 %1971, %v338_v12   ;;  %v341_v16 = vld [vmem:[%s2265_s28 + $0x18] sm:$0xff]  ;;  %v342_v24 = vld [vmem:[%s2265_s28 + $0x20] sm:$0xff]  ;;  %v343_v28 = vld [vmem:[%s2265_s28 + $0x28] sm:$0xff] }
  0x14   : > { %1908 = vmatpush3.bf16.msra.mxu0 %v1905_v10  ;;  %v344_v32 = vld [vmem:[%s2265_s28 + $0x30] sm:$0xff]  ;;  %v345_v34 = vld [vmem:[%s2265_s28 + $0x38] sm:$0xff]  ;;  %v346_v35 = vld [vmem:[%s2265_s28 + $0x40] sm:$0xff] }
  0x15   : > { %1910 = vmatprep.subr.bf16.mxu0 %v1909_v19  ;;  %v347_v36 = vld [vmem:[%s2265_s28 + $0x48] sm:$0xff]  ;;  %v348_v37 = vld [vmem:[%s2265_s28 + $0x50] sm:$0xff]  ;;  %v349_v38 = vld [vmem:[%s2265_s28 + $0x58] sm:$0xff] }
  0x16   : > { %v350_v39 = vld [vmem:[%s2265_s28 + $0x60] sm:$0xff]  ;;  %v351_v40 = vld [vmem:[%s2265_s28 + $0x68] sm:$0xff]  ;;  %v352_v41 = vld [vmem:[%s2265_s28 + $0x70] sm:$0xff] }
  0x17   : > { %1974 = vset.pattern.permute.xlu1 %v2177_v13  ;;  %1972 = vset.pattern.permute.xlu0 %v2177_v13  ;;  %v353_v42 = vld [vmem:[%s2265_s28 + $0x78] sm:$0xff]  ;;  %v354_v43 = vld [vmem:[%s2265_s28 + $0x80] sm:$0xff]  ;;  %v355_v44 = vld [vmem:[%s2265_s28 + $0x88] sm:$0xff] }
  0x18   : > { %573 = vperm.xlu1 %1974, %v339_v11   ;;  %569 = vperm.xlu0 %1972, %v338_v12   ;;  %v356_v45 = vld [vmem:[%s2265_s28 + $0x90] sm:$0xff]  ;;  %v357_v46 = vld [vmem:[%s2265_s28 + $0x98] sm:$0xff]  ;;  %v358_v47 = vld [vmem:[%s2265_s28 + $0xa0] sm:$0xff] }
  0x19   : > { %1912 = vmatpush3.bf16.msra.mxu0 %v1909_v19  ;;  %v359_v48 = vld [vmem:[%s2265_s28 + $0xa8] sm:$0xff]  ;;  %v360_v49 = vld [vmem:[%s2265_s28 + $0xb0] sm:$0xff]  ;;  %v361_v50 = vld [vmem:[%s2265_s28 + $0xb8] sm:$0xff] }
  0x1a   : > { %1914 = vmatprep.subr.bf16.mxu0 %v1913_v21  ;;  %v362_v51 = vld [vmem:[%s2265_s28 + $0xc0] sm:$0xff]  ;;  %v363_v52 = vld [vmem:[%s2265_s28 + $0xc8] sm:$0xff]  ;;  %v364_v53 = vld [vmem:[%s2265_s28 + $0xd0] sm:$0xff] }
  0x1b   : > { %v365_v54 = vld [vmem:[%s2265_s28 + $0xd8] sm:$0xff]  ;;  %v366_v55 = vld [vmem:[%s2265_s28 + $0xe0] sm:$0xff]  ;;  %v367_v56 = vld [vmem:[%s2265_s28 + $0xe8] sm:$0xff] }
  0x1c   : > { %1975 = vset.pattern.permute.xlu1 %v2176_v4  ;;  %577 = vperm.xlu0 %1972, %v340_v14   ;;  %v368_v58 = vld [vmem:[%s2265_s28 + $0xf0] sm:$0xff]  ;;  %v369_v60 = vld [vmem:[%s2265_s28 + $0xf8] sm:$0xff]  ;;  %v2343_v10 = vld [vmem:[%s2706_s2] ss:$0 sm:$0xff] }
  0x1d   : > { %384 = vperm.xlu1 %1975, %v340_v14   ;;  %1916 = vmatpush3.bf16.msra.mxu0 %v1913_v21 }
  0x1e   : > { %1918 = vmatprep.subr.bf16.mxu0 %v1917_v25 }
  0x20   : > { %581 = vperm.xlu0 %1972, %v341_v16  }
  0x21   : > { %389 = vperm.xlu1 %1975, %v341_v16   ;;  %1920 = vmatpush3.bf16.msra.mxu0 %v1917_v25  ;;  %v1114_v25 = vld [vmem:[%s2709_s5] sm:$0xff] }
  0x22   : > { %1922 = vmatprep.subr.bf16.mxu0 %v1921_v29  ;;  %v1929_v30 = vpack.c.bf16 %v1115_v26, %v1114_v25 }
  0x24   : > { %585 = vperm.xlu0 %1972, %v342_v24   ;;  %1930 = vmatprep.subr.bf16.mxu1 %v1929_v30 }
  0x25   : > { %394 = vperm.xlu1 %1975, %v342_v24   ;;  %1924 = vmatpush3.bf16.msra.mxu0 %v1921_v29 }
  0x26   : > { %1926 = vmatprep.subr.bf16.mxu0 %v1925_v33  ;;  %1932 = vmatpush3.bf16.msra.mxu1 %v1929_v30 }
  0x28   : > { %589 = vperm.xlu0 %1972, %v343_v28  }
  0x29   : > { %399 = vperm.xlu1 %1975, %v343_v28   ;;  %1928 = vmatpush3.bf16.msra.mxu0 %v1925_v33 }
  0x2c   : > { %593 = vperm.xlu0 %1972, %v344_v32  }
  0x2d   : > { %404 = vperm.xlu1 %1975, %v344_v32  }
  0x30   : > { %597 = vperm.xlu0 %1972, %v345_v34  }
  0x31   : > { %409 = vperm.xlu1 %1975, %v345_v34   ;;  %v1933_v34 = vpack.c.bf16 %v1117_v31, %v1116_v27 }
  0x33   : > { %1934 = vmatprep.subr.bf16.mxu1 %v1933_v34 }
  0x34   : > { %601 = vperm.xlu0 %1972, %v346_v35   ;;  %1936 = vmatpush3.bf16.msra.mxu1 %v1933_v34 }
  0x35   : > { %414 = vperm.xlu1 %1975, %v346_v35   ;;  %v1118_v35 = vld [vmem:[%s2709_s5 + $0x20] sm:$0xff] }
  0x38   : > { %605 = vperm.xlu0 %1972, %v347_v36  }
  0x39   : > { %419 = vperm.xlu1 %1975, %v347_v36   ;;  %v1119_v36 = vld [vmem:[%s2709_s5 + $0x28] sm:$0xff] }
  0x3c   : > { %609 = vperm.xlu0 %1972, %v348_v37  }
  0x3d   : > { %424 = vperm.xlu1 %1975, %v348_v37  }
  0x40   : > { %613 = vperm.xlu0 %1972, %v349_v38  }
  0x41   : > { %429 = vperm.xlu1 %1975, %v349_v38  }
  0x44   : > { %617 = vperm.xlu0 %1972, %v350_v39  }
  0x45   : > { %434 = vperm.xlu1 %1975, %v350_v39  }
  0x48   : > { %621 = vperm.xlu0 %1972, %v351_v40  }
  0x49   : > { %439 = vperm.xlu1 %1975, %v351_v40  }
  0x4c   : > { %625 = vperm.xlu0 %1972, %v352_v41  }
  0x4d   : > { %444 = vperm.xlu1 %1975, %v352_v41   ;;  %v1937_v41 = vpack.c.bf16 %v1119_v36, %v1118_v35 }
  0x4f   : > { %1938 = vmatprep.subr.bf16.mxu1 %v1937_v41 }
  0x50   : > { %629 = vperm.xlu0 %1972, %v353_v42   ;;  %1940 = vmatpush3.bf16.msra.mxu1 %v1937_v41 }
  0x51   : > { %449 = vperm.xlu1 %1975, %v353_v42  }
  0x54   : > { %633 = vperm.xlu0 %1972, %v354_v43  }
  0x55   : > { %454 = vperm.xlu1 %1975, %v354_v43  }
  0x58   : > { %637 = vperm.xlu0 %1972, %v355_v44  }
  0x59   : > { %459 = vperm.xlu1 %1975, %v355_v44  }
  0x5c   : > { %641 = vperm.xlu0 %1972, %v356_v45  }
  0x5d   : > { %464 = vperm.xlu1 %1975, %v356_v45   ;;  %v1120_v45 = vld [vmem:[%s2709_s5 + $0x30] sm:$0xff] }
  0x60   : > { %645 = vperm.xlu0 %1972, %v357_v46  }
  0x61   : > { %469 = vperm.xlu1 %1975, %v357_v46   ;;  %v1121_v46 = vld [vmem:[%s2709_s5 + $0x38] sm:$0xff] }
  0x64   : > { %649 = vperm.xlu0 %1972, %v358_v47  }
  0x65   : > { %474 = vperm.xlu1 %1975, %v358_v47  }
  0x68   : > { %653 = vperm.xlu0 %1972, %v359_v48  }
  0x69   : > { %479 = vperm.xlu1 %1975, %v359_v48  }
  0x6c   : > { %657 = vperm.xlu0 %1972, %v360_v49  }
  0x6d   : > { %484 = vperm.xlu1 %1975, %v360_v49  }
  0x70   : > { %661 = vperm.xlu0 %1972, %v361_v50  }
  0x71   : > { %489 = vperm.xlu1 %1975, %v361_v50  }
  0x74   : > { %665 = vperm.xlu0 %1972, %v362_v51  }
  0x75   : > { %494 = vperm.xlu1 %1975, %v362_v51  }
  0x78   : > { %669 = vperm.xlu0 %1972, %v363_v52  }
  0x79   : > { %499 = vperm.xlu1 %1975, %v363_v52   ;;  %v1941_v52 = vpack.c.bf16 %v1121_v46, %v1120_v45 }
  0x7b   : > { %1942 = vmatprep.subr.bf16.mxu1 %v1941_v52 }
  0x7c   : > { %673 = vperm.xlu0 %1972, %v364_v53   ;;  %1944 = vmatpush3.bf16.msra.mxu1 %v1941_v52 }
  0x7d   : > { %504 = vperm.xlu1 %1975, %v364_v53  }
  0x80   : > { %677 = vperm.xlu0 %1972, %v365_v54  }
  0x81   : > { %509 = vperm.xlu1 %1975, %v365_v54  }
  0x84   : > { %681 = vperm.xlu0 %1972, %v366_v55  }
  0x85   : > { %514 = vperm.xlu1 %1975, %v366_v55  }
  0x88   : > { %685 = vperm.xlu0 %1972, %v367_v56  }
  0x89   : > { %519 = vperm.xlu1 %1975, %v367_v56  }
  0x8c   : > { %689 = vperm.xlu0 %1972, %v368_v58  }
  0x8d   : > { %524 = vperm.xlu1 %1975, %v368_v58  }
  0x90   : > { %693 = vperm.xlu0 %1972, %v369_v60  }
  0x91   : > { %529 = vperm.xlu1 %1975, %v369_v60  }
  0x92   : > { %v380_v0 = vpop.permute.xlu1 %379  ;;  %v375_v1 = vpop.permute.xlu0 %374 }
  0x93   : > { %v537_v6 = vmul.f32 %v2332_v2, %v380_v0  ;;  %v536_v7 = vmul.f32 %v2332_v2, %v375_v1 }
  0x97   : > { %v574_v4 = vpop.permute.xlu1 %573  ;;  %v570_v5 = vpop.permute.xlu0 %569 }
  0x98   : > { %v701_v8 = vmul.f32 %v2334_v3, %v574_v4  ;;  %v700_v9 = vmul.f32 %v2334_v3, %v570_v5 }
  0x9a   : > { %v733_v11 = vadd.f32 %v701_v8, %v537_v6  ;;  %v732_v12 = vadd.f32 %v700_v9, %v536_v7 }
  0x9b   : > { %v578_v13 = vpop.permute.xlu0 %577 }
  0x9c   : > { %v771_v14 = vadd.f32 %v2343_v10, %v733_v11  ;;  %v702_v15 = vmul.f32 %v2334_v3, %v578_v13  ;;  %v385_v16 = vpop.permute.xlu1 %384  ;;  %v770_v17 = vadd.f32 %v2343_v10, %v732_v12 }
  0x9d   : > { %v538_v18 = vmul.f32 %v2332_v2, %v385_v16 }
  0x9e   : > { %1976 = vtanh.f32 %v771_v14 }
  0x9f   : > { %v734_v19 = vadd.f32 %v702_v15, %v538_v18  ;;  %v582_v20 = vpop.permute.xlu0 %581  ;;  %1978 = vtanh.f32 %v770_v17 }
  0xa0   : > { %v703_v21 = vmul.f32 %v2334_v3, %v582_v20  ;;  %v390_v22 = vpop.permute.xlu1 %389 }
  0xa1   : > { %v772_v23 = vadd.f32 %v2343_v10, %v734_v19  ;;  %v539_v24 = vmul.f32 %v2332_v2, %v390_v22 }
  0xa3   : > { %1980 = vtanh.f32 %v772_v23  ;;  %v735_v28 = vadd.f32 %v703_v21, %v539_v24  ;;  %v586_v29 = vpop.permute.xlu0 %585 }
  0xa4   : > { %v704_v32 = vmul.f32 %v2334_v3, %v586_v29  ;;  %v395_v33 = vpop.permute.xlu1 %394 }
  0xa5   : > { %v773_v37 = vadd.f32 %v2343_v10, %v735_v28  ;;  %v540_v38 = vmul.f32 %v2332_v2, %v395_v33 }
  0xa7   : > { %1982 = vtanh.f32 %v773_v37  ;;  %v736_v39 = vadd.f32 %v704_v32, %v540_v38  ;;  %v590_v40 = vpop.permute.xlu0 %589 }
  0xa8   : > { %v1977_v42 = vpop.eup %1976  ;;  %v705_v43 = vmul.f32 %v2334_v3, %v590_v40  ;;  %v400_v44 = vpop.permute.xlu1 %399 }
  0xa9   : > { %v1979_v47 = vpop.eup %1978  ;;  %v774_v48 = vadd.f32 %v2343_v10, %v736_v39  ;;  %v541_v49 = vmul.f32 %v2332_v2, %v400_v44 }
  0xaa   : > { %1769 = vmatprep.mubr.f32.mxu0 %v1979_v47 }
  0xab   : > { %1984 = vtanh.f32 %v774_v48  ;;  %v737_v50 = vadd.f32 %v705_v43, %v541_v49  ;;  %1770 = vmatmul.mubr.f32.vlgmr.msra.gmra.mrb[0].mxu0 %v1977_v42  ;;  %v594_v51 = vpop.permute.xlu0 %593 }
  0xac   : > { %v706_v53 = vmul.f32 %v2334_v3, %v594_v51  ;;  %v405_v54 = vpop.permute.xlu1 %404 }
  0xad   : > { %v1981_v55 = vpop.eup %1980  ;;  %v775_v56 = vadd.f32 %v2343_v10, %v737_v50  ;;  %v542_v57 = vmul.f32 %v2332_v2, %v405_v54 }
  0xae   : > { %1772 = vmatprep.mubr.f32.mxu0 %v1981_v55 }
  0xaf   : > { %1986 = vtanh.f32 %v775_v56  ;;  %v738_v58 = vadd.f32 %v706_v53, %v542_v57  ;;  %v598_v59 = vpop.permute.xlu0 %597 }
  0xb0   : > { %v707_v60 = vmul.f32 %v2334_v3, %v598_v59  ;;  %v410_v61 = vpop.permute.xlu1 %409 }
  0xb1   : > { %v1983_v62 = vpop.eup %1982  ;;  %v776_v63 = vadd.f32 %v2343_v10, %v738_v58  ;;  %v543_v0 = vmul.f32 %v2332_v2, %v410_v61 }
  0xb2   : > { %1773 = vmatmul.mubr.f32.gmra.mrb[2].mxu0 %v1983_v62 }
  0xb3   : > { %1988 = vtanh.f32 %v776_v63  ;;  %v739_v1 = vadd.f32 %v707_v60, %v543_v0  ;;  %v602_v4 = vpop.permute.xlu0 %601 }
  0xb4   : > { %v708_v5 = vmul.f32 %v2334_v3, %v602_v4  ;;  %v415_v6 = vpop.permute.xlu1 %414 }
  0xb5   : > { %v1985_v7 = vpop.eup %1984  ;;  %v777_v8 = vadd.f32 %v2343_v10, %v739_v1  ;;  %v544_v9 = vmul.f32 %v2332_v2, %v415_v6 }
  0xb6   : > { %1775 = vmatprep.mubr.f32.mxu0 %v1985_v7 }
  0xb7   : > { %1990 = vtanh.f32 %v777_v8  ;;  %v740_v11 = vadd.f32 %v708_v5, %v544_v9  ;;  %v606_v12 = vpop.permute.xlu0 %605 }
  0xb8   : > { %v709_v13 = vmul.f32 %v2334_v3, %v606_v12  ;;  %v420_v14 = vpop.permute.xlu1 %419 }
  0xb9   : > { %v1987_v15 = vpop.eup %1986  ;;  %v778_v16 = vadd.f32 %v2343_v10, %v740_v11  ;;  %v545_v17 = vmul.f32 %v2332_v2, %v420_v14 }
  0xba   : > { %1776 = vmatmul.mubr.f32.gmra.mrb[4].mxu0 %v1987_v15 }
  0xbb   : > { %1992 = vtanh.f32 %v778_v16  ;;  %v741_v18 = vadd.f32 %v709_v13, %v545_v17  ;;  %v610_v19 = vpop.permute.xlu0 %609 }
  0xbc   : > { %v710_v20 = vmul.f32 %v2334_v3, %v610_v19  ;;  %v425_v21 = vpop.permute.xlu1 %424 }
  0xbd   : > { %v1989_v22 = vpop.eup %1988  ;;  %v779_v23 = vadd.f32 %v2343_v10, %v741_v18  ;;  %v546_v24 = vmul.f32 %v2332_v2, %v425_v21 }
  0xbe   : > { %1778 = vmatprep.mubr.f32.mxu0 %v1989_v22 }
  0xbf   : > { %1994 = vtanh.f32 %v779_v23  ;;  %v742_v25 = vadd.f32 %v710_v20, %v546_v24  ;;  %v614_v26 = vpop.permute.xlu0 %613 }
  0xc0   : > { %v711_v27 = vmul.f32 %v2334_v3, %v614_v26  ;;  %v430_v28 = vpop.permute.xlu1 %429 }
  0xc1   : > { %v1991_v29 = vpop.eup %1990  ;;  %v780_v30 = vadd.f32 %v2343_v10, %v742_v25  ;;  %v547_v31 = vmul.f32 %v2332_v2, %v430_v28 }
  0xc2   : > { %1779 = vmatmul.mubr.f32.gmra.mrb[6].mxu0 %v1991_v29 }
  0xc3   : > { %1996 = vtanh.f32 %v780_v30  ;;  %v743_v32 = vadd.f32 %v711_v27, %v547_v31  ;;  %v618_v33 = vpop.permute.xlu0 %617 }
  0xc4   : > { %v712_v34 = vmul.f32 %v2334_v3, %v618_v33  ;;  %v435_v35 = vpop.permute.xlu1 %434 }
  0xc5   : > { %v1993_v36 = vpop.eup %1992  ;;  %v781_v37 = vadd.f32 %v2343_v10, %v743_v32  ;;  %v548_v38 = vmul.f32 %v2332_v2, %v435_v35 }
  0xc6   : > { %1781 = vmatprep.mubr.f32.mxu0 %v1993_v36 }
  0xc7   : > { %1998 = vtanh.f32 %v781_v37  ;;  %v744_v39 = vadd.f32 %v712_v34, %v548_v38  ;;  %v622_v40 = vpop.permute.xlu0 %621 }
  0xc8   : > { %v713_v41 = vmul.f32 %v2334_v3, %v622_v40  ;;  %v440_v42 = vpop.permute.xlu1 %439 }
  0xc9   : > { %v1995_v43 = vpop.eup %1994  ;;  %v782_v44 = vadd.f32 %v2343_v10, %v744_v39  ;;  %v549_v45 = vmul.f32 %v2332_v2, %v440_v42 }
  0xca   : > { %1782 = vmatmul.mubr.f32.gmra.mrb[8].mxu0 %v1995_v43 }
  0xcb   : > { %2000 = vtanh.f32 %v782_v44  ;;  %v745_v46 = vadd.f32 %v713_v41, %v549_v45  ;;  %v626_v47 = vpop.permute.xlu0 %625 }
  0xcc   : > { %v714_v48 = vmul.f32 %v2334_v3, %v626_v47  ;;  %v445_v49 = vpop.permute.xlu1 %444 }
  0xcd   : > { %v1997_v50 = vpop.eup %1996  ;;  %v783_v51 = vadd.f32 %v2343_v10, %v745_v46  ;;  %v550_v52 = vmul.f32 %v2332_v2, %v445_v49 }
  0xce   : > { %1784 = vmatprep.mubr.f32.mxu0 %v1997_v50 }
  0xcf   : > { %2002 = vtanh.f32 %v783_v51  ;;  %v746_v53 = vadd.f32 %v714_v48, %v550_v52  ;;  %v630_v54 = vpop.permute.xlu0 %629 }
  0xd0   : > { %v715_v55 = vmul.f32 %v2334_v3, %v630_v54  ;;  %v450_v56 = vpop.permute.xlu1 %449 }
  0xd1   : > { %v1999_v57 = vpop.eup %1998  ;;  %v784_v58 = vadd.f32 %v2343_v10, %v746_v53  ;;  %v551_v59 = vmul.f32 %v2332_v2, %v450_v56 }
  0xd2   : > { %1785 = vmatmul.mubr.f32.gmra.mrb[10].mxu0 %v1999_v57 }
  0xd3   : > { %2004 = vtanh.f32 %v784_v58  ;;  %v747_v60 = vadd.f32 %v715_v55, %v551_v59  ;;  %v634_v61 = vpop.permute.xlu0 %633 }
  0xd4   : > { %v716_v62 = vmul.f32 %v2334_v3, %v634_v61  ;;  %v455_v63 = vpop.permute.xlu1 %454 }
  0xd5   : > { %v2001_v0 = vpop.eup %2000  ;;  %v785_v1 = vadd.f32 %v2343_v10, %v747_v60  ;;  %v552_v4 = vmul.f32 %v2332_v2, %v455_v63 }
  0xd6   : > { %1787 = vmatprep.mubr.f32.mxu0 %v2001_v0 }
  0xd7   : > { %2006 = vtanh.f32 %v785_v1  ;;  %v748_v5 = vadd.f32 %v716_v62, %v552_v4  ;;  %v638_v6 = vpop.permute.xlu0 %637 }
  0xd8   : > { %v717_v7 = vmul.f32 %v2334_v3, %v638_v6  ;;  %v460_v8 = vpop.permute.xlu1 %459 }
  0xd9   : > { %v2003_v9 = vpop.eup %2002  ;;  %v786_v11 = vadd.f32 %v2343_v10, %v748_v5  ;;  %v553_v12 = vmul.f32 %v2332_v2, %v460_v8 }
  0xda   : > { %1788 = vmatmul.mubr.f32.gmra.mrb[12].mxu0 %v2003_v9  ;;  %v1122_v9 = vld [vmem:[%s2709_s5 + $0x40] sm:$0xff] }
  0xdb   : > { %2008 = vtanh.f32 %v786_v11  ;;  %v749_v13 = vadd.f32 %v717_v7, %v553_v12  ;;  %v642_v14 = vpop.permute.xlu0 %641  ;;  %v1123_v11 = vld [vmem:[%s2709_s5 + $0x48] sm:$0xff] }
  0xdc   : > { %v718_v15 = vmul.f32 %v2334_v3, %v642_v14  ;;  %v465_v16 = vpop.permute.xlu1 %464  ;;  %v1945_v14 = vpack.c.bf16 %v1123_v11, %v1122_v9 }
  0xdd   : > { %v2005_v17 = vpop.eup %2004  ;;  %v787_v18 = vadd.f32 %v2343_v10, %v749_v13  ;;  %v554_v19 = vmul.f32 %v2332_v2, %v465_v16 }
  0xde   : > { %1790 = vmatprep.mubr.f32.mxu0 %v2005_v17  ;;  %1946 = vmatprep.subr.bf16.mxu1 %v1945_v14 }
  0xdf   : > { %2010 = vtanh.f32 %v787_v18  ;;  %v750_v20 = vadd.f32 %v718_v15, %v554_v19  ;;  %v646_v21 = vpop.permute.xlu0 %645  ;;  %1948 = vmatpush3.bf16.msra.mxu1 %v1945_v14 }
  0xe0   : > { %v719_v22 = vmul.f32 %v2334_v3, %v646_v21  ;;  %v470_v23 = vpop.permute.xlu1 %469  ;;  %v1125_v21 = vld [vmem:[%s2709_s5 + $0x58] sm:$0xff] }
  0xe1   : > { %v2007_v24 = vpop.eup %2006  ;;  %v788_v25 = vadd.f32 %v2343_v10, %v750_v20  ;;  %v555_v26 = vmul.f32 %v2332_v2, %v470_v23  ;;  %v1124_v20 = vld [vmem:[%s2709_s5 + $0x50] sm:$0xff] }
  0xe2   : > { %1791 = vmatmul.mubr.f32.gmra.mrb[14].mxu0 %v2007_v24  ;;  %v1949_v24 = vpack.c.bf16 %v1125_v21, %v1124_v20 }
  0xe3   : > { %2012 = vtanh.f32 %v788_v25  ;;  %v751_v27 = vadd.f32 %v719_v22, %v555_v26  ;;  %v650_v28 = vpop.permute.xlu0 %649 }
  0xe4   : > { %v720_v29 = vmul.f32 %v2334_v3, %v650_v28  ;;  %v475_v30 = vpop.permute.xlu1 %474  ;;  %1950 = vmatprep.subr.bf16.mxu1 %v1949_v24 }
  0xe5   : > { %v2009_v31 = vpop.eup %2008  ;;  %v789_v32 = vadd.f32 %v2343_v10, %v751_v27  ;;  %v556_v33 = vmul.f32 %v2332_v2, %v475_v30  ;;  %1952 = vmatpush3.bf16.msra.mxu1 %v1949_v24  ;;  %v1126_v30 = vld [vmem:[%s2709_s5 + $0x60] sm:$0xff] }
  0xe6   : > { %1793 = vmatprep.mubr.f32.mxu0 %v2009_v31  ;;  %v1127_v31 = vld [vmem:[%s2709_s5 + $0x68] sm:$0xff] }
  0xe7   : > { %2014 = vtanh.f32 %v789_v32  ;;  %v752_v34 = vadd.f32 %v720_v29, %v556_v33  ;;  %v654_v35 = vpop.permute.xlu0 %653 }
  0xe8   : > { %v721_v36 = vmul.f32 %v2334_v3, %v654_v35  ;;  %v480_v37 = vpop.permute.xlu1 %479 }
  0xe9   : > { %v2011_v38 = vpop.eup %2010  ;;  %v790_v39 = vadd.f32 %v2343_v10, %v752_v34  ;;  %v557_v40 = vmul.f32 %v2332_v2, %v480_v37  ;;  %v1953_v34 = vpack.c.bf16 %v1127_v31, %v1126_v30 }
  0xea   : > { %1794 = vmatmul.mubr.f32.gmra.mrb[16].mxu0 %v2011_v38 }
  0xeb   : > { %2016 = vtanh.f32 %v790_v39  ;;  %v753_v41 = vadd.f32 %v721_v36, %v557_v40  ;;  %v658_v42 = vpop.permute.xlu0 %657  ;;  %1954 = vmatprep.subr.bf16.mxu1 %v1953_v34  ;;  %v1128_v40 = vld [vmem:[%s2709_s5 + $0x70] sm:$0xff] }
  0xec   : > { %v722_v43 = vmul.f32 %v2334_v3, %v658_v42  ;;  %v485_v44 = vpop.permute.xlu1 %484  ;;  %1956 = vmatpush3.bf16.msra.mxu1 %v1953_v34 }
  0xed   : > { %v2013_v45 = vpop.eup %2012  ;;  %v791_v46 = vadd.f32 %v2343_v10, %v753_v41  ;;  %v558_v47 = vmul.f32 %v2332_v2, %v485_v44  ;;  %v1129_v41 = vld [vmem:[%s2709_s5 + $0x78] sm:$0xff] }
  0xee   : > { %1796 = vmatprep.mubr.f32.mxu0 %v2013_v45  ;;  %v1957_v44 = vpack.c.bf16 %v1129_v41, %v1128_v40 }
  0xef   : > { %2018 = vtanh.f32 %v791_v46  ;;  %v754_v48 = vadd.f32 %v722_v43, %v558_v47  ;;  %v662_v49 = vpop.permute.xlu0 %661 }
  0xf0   : > { %v723_v50 = vmul.f32 %v2334_v3, %v662_v49  ;;  %v490_v51 = vpop.permute.xlu1 %489  ;;  %1958 = vmatprep.subr.bf16.mxu1 %v1957_v44 }
  0xf1   : > { %v2015_v52 = vpop.eup %2014  ;;  %v792_v53 = vadd.f32 %v2343_v10, %v754_v48  ;;  %v559_v54 = vmul.f32 %v2332_v2, %v490_v51  ;;  %1960 = vmatpush3.bf16.msra.mxu1 %v1957_v44 }
  0xf2   : > { %1797 = vmatmul.mubr.f32.gmra.mrb[18].mxu0 %v2015_v52 }
  0xf3   : > { %2020 = vtanh.f32 %v792_v53  ;;  %v755_v55 = vadd.f32 %v723_v50, %v559_v54  ;;  %v666_v56 = vpop.permute.xlu0 %665 }
  0xf4   : > { %v724_v57 = vmul.f32 %v2334_v3, %v666_v56  ;;  %v495_v58 = vpop.permute.xlu1 %494 }
  0xf5   : > { %v2017_v59 = vpop.eup %2016  ;;  %v793_v60 = vadd.f32 %v2343_v10, %v755_v55  ;;  %v560_v61 = vmul.f32 %v2332_v2, %v495_v58 }
  0xf6   : > { %1799 = vmatprep.mubr.f32.mxu0 %v2017_v59 }
  0xf7   : > { %2022 = vtanh.f32 %v793_v60  ;;  %v756_v62 = vadd.f32 %v724_v57, %v560_v61  ;;  %v670_v63 = vpop.permute.xlu0 %669 }
  0xf8   : > { %v725_v0 = vmul.f32 %v2334_v3, %v670_v63  ;;  %v500_v1 = vpop.permute.xlu1 %499 }
  0xf9   : > { %v2019_v4 = vpop.eup %2018  ;;  %v794_v5 = vadd.f32 %v2343_v10, %v756_v62  ;;  %v561_v6 = vmul.f32 %v2332_v2, %v500_v1 }
  0xfa   : > { %1800 = vmatmul.mubr.f32.gmra.mrb[20].mxu0 %v2019_v4 }
  0xfb   : > { %2024 = vtanh.f32 %v794_v5  ;;  %v757_v7 = vadd.f32 %v725_v0, %v561_v6  ;;  %v674_v8 = vpop.permute.xlu0 %673 }
  0xfc   : > { %v726_v12 = vmul.f32 %v2334_v3, %v674_v8  ;;  %v505_v13 = vpop.permute.xlu1 %504 }
  0xfd   : > { %v2021_v15 = vpop.eup %2020  ;;  %v795_v16 = vadd.f32 %v2343_v10, %v757_v7  ;;  %v562_v17 = vmul.f32 %v2332_v2, %v505_v13 }
  0xfe   : > { %1802 = vmatprep.mubr.f32.mxu0 %v2021_v15 }
  0xff   : > { %2026 = vtanh.f32 %v795_v16  ;;  %v758_v18 = vadd.f32 %v726_v12, %v562_v17  ;;  %v678_v19 = vpop.permute.xlu0 %677 }
 0x100   : > { %v727_v22 = vmul.f32 %v2334_v3, %v678_v19  ;;  %v510_v23 = vpop.permute.xlu1 %509 }
 0x101   : > { %v2023_v25 = vpop.eup %2022  ;;  %v796_v26 = vadd.f32 %v2343_v10, %v758_v18  ;;  %v563_v27 = vmul.f32 %v2332_v2, %v510_v23 }
 0x102   : > { %1803 = vmatmul.mubr.f32.gmra.mrb[22].mxu0 %v2023_v25 }
 0x103   : > { %2028 = vtanh.f32 %v796_v26  ;;  %v759_v28 = vadd.f32 %v727_v22, %v563_v27  ;;  %v682_v29 = vpop.permute.xlu0 %681 }
 0x104   : > { %v728_v32 = vmul.f32 %v2334_v3, %v682_v29  ;;  %v515_v33 = vpop.permute.xlu1 %514 }
 0x105   : > { %v2025_v35 = vpop.eup %2024  ;;  %v797_v36 = vadd.f32 %v2343_v10, %v759_v28  ;;  %v564_v37 = vmul.f32 %v2332_v2, %v515_v33 }
 0x106   : > { %1805 = vmatprep.mubr.f32.mxu0 %v2025_v35 }
 0x107   : > { %2030 = vtanh.f32 %v797_v36  ;;  %v760_v38 = vadd.f32 %v728_v32, %v564_v37  ;;  %v686_v39 = vpop.permute.xlu0 %685 }
 0x108   : > { %v729_v42 = vmul.f32 %v2334_v3, %v686_v39  ;;  %v520_v43 = vpop.permute.xlu1 %519 }
 0x109   : > { %v2027_v45 = vpop.eup %2026  ;;  %v798_v46 = vadd.f32 %v2343_v10, %v760_v38  ;;  %v565_v47 = vmul.f32 %v2332_v2, %v520_v43 }
 0x10a   : > { %1806 = vmatmul.mubr.f32.gmra.mrb[24].mxu0 %v2027_v45 }
 0x10b   : > { %2032 = vtanh.f32 %v798_v46  ;;  %v761_v48 = vadd.f32 %v729_v42, %v565_v47  ;;  %v690_v49 = vpop.permute.xlu0 %689 }
 0x10c   : > { %v730_v50 = vmul.f32 %v2334_v3, %v690_v49  ;;  %v525_v51 = vpop.permute.xlu1 %524 }
 0x10d   : > { %v2029_v52 = vpop.eup %2028  ;;  %v799_v53 = vadd.f32 %v2343_v10, %v761_v48  ;;  %v566_v54 = vmul.f32 %v2332_v2, %v525_v51 }
 0x10e   : > { %1808 = vmatprep.mubr.f32.mxu0 %v2029_v52 }
 0x10f   : > { %2034 = vtanh.f32 %v799_v53  ;;  %v762_v55 = vadd.f32 %v730_v50, %v566_v54  ;;  %v694_v56 = vpop.permute.xlu0 %693 }
 0x110   : > { %v731_v57 = vmul.f32 %v2334_v3, %v694_v56  ;;  %v530_v58 = vpop.permute.xlu1 %529  ;;  %v2488_v3 = vld [vmem:[%s2708_s4] ss:$0 sm:$0xff] }
 0x111   : > { %v2031_v59 = vpop.eup %2030  ;;  %v800_v60 = vadd.f32 %v2343_v10, %v762_v55  ;;  %v567_v61 = vmul.f32 %v2332_v2, %v530_v58 }
 0x112   : > { %1809 = vmatmul.mubr.f32.gmra.mrb[26].mxu0 %v2031_v59 }
 0x113   : > { %2036 = vtanh.f32 %v800_v60  ;;  %v763_v62 = vadd.f32 %v731_v57, %v567_v61 }
 0x115   : > { %v2033_v63 = vpop.eup %2032  ;;  %v801_v0 = vadd.f32 %v2343_v10, %v763_v62 }
 0x116   : > { %1811 = vmatprep.mubr.f32.mxu0 %v2033_v63 }
 0x117   : > { %2038 = vtanh.f32 %v801_v0 }
 0x119   : > { %v2035_v1 = vpop.eup %2034 }
 0x11a   : > { %1812 = vmatmul.mubr.f32.gmra.mrb[28].mxu0 %v2035_v1 }
 0x11d   : > { %v2037_v4 = vpop.eup %2036 }
 0x11e   : > { %1814 = vmatprep.mubr.f32.mxu0 %v2037_v4 }
 0x121   : > { %v2039_v5 = vpop.eup %2038 }
 0x122   : > { %1815 = vmatmul.mubr.f32.gmra.mrb[30].mxu0 %v2039_v5 }
 0x17e   : > { %v1771_v2 = vpop.f32.mrb[0].mxu0 }
 0x17f   : > { %v929_v6 = vadd.f32 %v1771_v2, %v2488_v3  ;;  %v923_v7 = vpop.f32.mrb[1].mxu0 }
 0x180   : > { %v924_v8 = vadd.f32 %v2488_v3, %v923_v7 }
 0x182   : > { %2040 = vtanh.f32 %v924_v8 }
 0x183   : > { %2042 = vtanh.f32 %v929_v6 }
 0x185   : > { %v1774_v10 = vpop.f32.mrb[2].mxu0 }
 0x186   : > { %v939_v9 = vadd.f32 %v1774_v10, %v2488_v3  ;;  %v933_v11 = vpop.f32.mrb[3].mxu0 }
 0x187   : > { %v934_v12 = vadd.f32 %v2488_v3, %v933_v11 }
 0x189   : > { %2044 = vtanh.f32 %v934_v12 }
 0x18a   : > { %2046 = vtanh.f32 %v939_v9 }
 0x18c   : > { %v2041_v13 = vpop.eup %2040 }
 0x18d   : > { %v2043_v14 = vpop.eup %2042  ;;  %1849 = vmatprep.mubr.f32.mxu1 %v2041_v13  ;;  %v1777_v15 = vpop.f32.mrb[4].mxu0 }
 0x18e   : > { %v949_v16 = vadd.f32 %v1777_v15, %v2488_v3  ;;  %1850 = vmatmul.mubr.f32.vlgmr.msra.gmra.mrb[0].mxu1 %v2043_v14  ;;  %v943_v17 = vpop.f32.mrb[5].mxu0 }
 0x18f   : > { %v944_v18 = vadd.f32 %v2488_v3, %v943_v17 }
 0x191   : > { %2048 = vtanh.f32 %v944_v18 }
 0x192   : > { %2050 = vtanh.f32 %v949_v16 }
 0x193   : > { %v2045_v19 = vpop.eup %2044 }
 0x194   : > { %v2047_v20 = vpop.eup %2046  ;;  %1852 = vmatprep.mubr.f32.mxu1 %v2045_v19 }
 0x195   : > { %v1780_v21 = vpop.f32.mrb[6].mxu0  ;;  %1853 = vmatmul.mubr.f32.gmra.mrb[2].mxu1 %v2047_v20 }
 0x196   : > { %v959_v22 = vadd.f32 %v1780_v21, %v2488_v3  ;;  %v953_v23 = vpop.f32.mrb[7].mxu0 }
 0x197   : > { %v954_v24 = vadd.f32 %v2488_v3, %v953_v23 }
 0x199   : > { %2052 = vtanh.f32 %v954_v24 }
 0x19a   : > { %2054 = vtanh.f32 %v959_v22 }
 0x19b   : > { %v2049_v25 = vpop.eup %2048 }
 0x19c   : > { %v2051_v26 = vpop.eup %2050  ;;  %1855 = vmatprep.mubr.f32.mxu1 %v2049_v25 }
 0x19d   : > { %v1783_v27 = vpop.f32.mrb[8].mxu0  ;;  %1856 = vmatmul.mubr.f32.gmra.mrb[4].mxu1 %v2051_v26 }
 0x19e   : > { %v969_v28 = vadd.f32 %v1783_v27, %v2488_v3  ;;  %v963_v29 = vpop.f32.mrb[9].mxu0 }
 0x19f   : > { %v964_v30 = vadd.f32 %v2488_v3, %v963_v29 }
 0x1a1   : > { %2056 = vtanh.f32 %v964_v30 }
 0x1a2   : > { %2058 = vtanh.f32 %v969_v28 }
 0x1a3   : > { %v2053_v31 = vpop.eup %2052 }
 0x1a4   : > { %v2055_v32 = vpop.eup %2054  ;;  %1858 = vmatprep.mubr.f32.mxu1 %v2053_v31 }
 0x1a5   : > { %v1786_v33 = vpop.f32.mrb[10].mxu0  ;;  %1859 = vmatmul.mubr.f32.gmra.mrb[6].mxu1 %v2055_v32 }
 0x1a6   : > { %v979_v34 = vadd.f32 %v1786_v33, %v2488_v3  ;;  %v973_v35 = vpop.f32.mrb[11].mxu0 }
 0x1a7   : > { %v974_v36 = vadd.f32 %v2488_v3, %v973_v35 }
 0x1a9   : > { %2060 = vtanh.f32 %v974_v36 }
 0x1aa   : > { %2062 = vtanh.f32 %v979_v34 }
 0x1ab   : > { %v2057_v37 = vpop.eup %2056 }
 0x1ac   : > { %v2059_v38 = vpop.eup %2058  ;;  %1861 = vmatprep.mubr.f32.mxu1 %v2057_v37 }
 0x1ad   : > { %v1789_v39 = vpop.f32.mrb[12].mxu0  ;;  %1862 = vmatmul.mubr.f32.gmra.mrb[8].mxu1 %v2059_v38  ;;  %v2525_v38 = vld [vmem:[%s2710_s6] ss:$0 sm:$0xff] }
 0x1ae   : > { %v989_v40 = vadd.f32 %v1789_v39, %v2488_v3  ;;  %v983_v41 = vpop.f32.mrb[13].mxu0 }
 0x1af   : > { %v984_v42 = vadd.f32 %v2488_v3, %v983_v41 }
 0x1b1   : > { %2064 = vtanh.f32 %v984_v42 }
 0x1b2   : > { %2066 = vtanh.f32 %v989_v40 }
 0x1b3   : > { %v2061_v43 = vpop.eup %2060 }
 0x1b4   : > { %v2063_v44 = vpop.eup %2062  ;;  %1864 = vmatprep.mubr.f32.mxu1 %v2061_v43 }
 0x1b5   : > { %v1792_v45 = vpop.f32.mrb[14].mxu0  ;;  %1865 = vmatmul.mubr.f32.gmra.mrb[10].mxu1 %v2063_v44 }
 0x1b6   : > { %v999_v46 = vadd.f32 %v1792_v45, %v2488_v3  ;;  %v993_v47 = vpop.f32.mrb[15].mxu0 }
 0x1b7   : > { %v994_v48 = vadd.f32 %v2488_v3, %v993_v47 }
 0x1b9   : > { %2068 = vtanh.f32 %v994_v48 }
 0x1ba   : > { %2070 = vtanh.f32 %v999_v46  ;;  %v2534_v46 = vld [vmem:[%s2711_s7] ss:$0 sm:$0xff] }
 0x1bb   : > { %v2065_v49 = vpop.eup %2064 }
 0x1bc   : > { %v2067_v50 = vpop.eup %2066  ;;  %1867 = vmatprep.mubr.f32.mxu1 %v2065_v49 }
 0x1bd   : > { %v1795_v51 = vpop.f32.mrb[16].mxu0  ;;  %1868 = vmatmul.mubr.f32.gmra.mrb[12].mxu1 %v2067_v50 }
 0x1be   : > { %v1009_v52 = vadd.f32 %v1795_v51, %v2488_v3  ;;  %v1003_v53 = vpop.f32.mrb[17].mxu0 }
 0x1bf   : > { %v1004_v54 = vadd.f32 %v2488_v3, %v1003_v53 }
 0x1c1   : > { %2072 = vtanh.f32 %v1004_v54 }
 0x1c2   : > { %2074 = vtanh.f32 %v1009_v52 }
 0x1c3   : > { %v2069_v55 = vpop.eup %2068 }
 0x1c4   : > { %v2071_v56 = vpop.eup %2070  ;;  %1870 = vmatprep.mubr.f32.mxu1 %v2069_v55 }
 0x1c5   : > { %v1798_v57 = vpop.f32.mrb[18].mxu0  ;;  %1871 = vmatmul.mubr.f32.gmra.mrb[14].mxu1 %v2071_v56 }
 0x1c6   : > { %v1019_v58 = vadd.f32 %v1798_v57, %v2488_v3  ;;  %v1013_v59 = vpop.f32.mrb[19].mxu0 }
 0x1c7   : > { %v1014_v60 = vadd.f32 %v2488_v3, %v1013_v59 }
 0x1c9   : > { %2076 = vtanh.f32 %v1014_v60 }
 0x1ca   : > { %2078 = vtanh.f32 %v1019_v58 }
 0x1cb   : > { %v2073_v61 = vpop.eup %2072 }
 0x1cc   : > { %v2075_v62 = vpop.eup %2074  ;;  %1873 = vmatprep.mubr.f32.mxu1 %v2073_v61 }
 0x1cd   : > { %v1801_v63 = vpop.f32.mrb[20].mxu0  ;;  %1874 = vmatmul.mubr.f32.gmra.mrb[16].mxu1 %v2075_v62 }
 0x1ce   : > { %v1029_v0 = vadd.f32 %v1801_v63, %v2488_v3  ;;  %v1023_v1 = vpop.f32.mrb[21].mxu0 }
 0x1cf   : > { %v1024_v4 = vadd.f32 %v2488_v3, %v1023_v1 }
 0x1d1   : > { %2080 = vtanh.f32 %v1024_v4 }
 0x1d2   : > { %2082 = vtanh.f32 %v1029_v0 }
 0x1d3   : > { %v2077_v5 = vpop.eup %2076 }
 0x1d4   : > { %v2079_v2 = vpop.eup %2078  ;;  %1876 = vmatprep.mubr.f32.mxu1 %v2077_v5 }
 0x1d5   : > { %v1804_v6 = vpop.f32.mrb[22].mxu0  ;;  %1877 = vmatmul.mubr.f32.gmra.mrb[18].mxu1 %v2079_v2 }
 0x1d6   : > { %v1039_v7 = vadd.f32 %v1804_v6, %v2488_v3  ;;  %v1033_v8 = vpop.f32.mrb[23].mxu0 }
 0x1d7   : > { %v1034_v10 = vadd.f32 %v2488_v3, %v1033_v8 }
 0x1d9   : > { %2084 = vtanh.f32 %v1034_v10 }
 0x1da   : > { %2086 = vtanh.f32 %v1039_v7 }
 0x1db   : > { %v2081_v9 = vpop.eup %2080 }
 0x1dc   : > { %v2083_v11 = vpop.eup %2082  ;;  %1879 = vmatprep.mubr.f32.mxu1 %v2081_v9 }
 0x1dd   : > { %v1807_v12 = vpop.f32.mrb[24].mxu0  ;;  %1880 = vmatmul.mubr.f32.gmra.mrb[20].mxu1 %v2083_v11 }
 0x1de   : > { %v1049_v13 = vadd.f32 %v1807_v12, %v2488_v3  ;;  %v1043_v14 = vpop.f32.mrb[25].mxu0 }
 0x1df   : > { %v1044_v15 = vadd.f32 %v2488_v3, %v1043_v14 }
 0x1e1   : > { %2088 = vtanh.f32 %v1044_v15 }
 0x1e2   : > { %2090 = vtanh.f32 %v1049_v13 }
 0x1e3   : > { %v2085_v16 = vpop.eup %2084 }
 0x1e4   : > { %v2087_v17 = vpop.eup %2086  ;;  %1882 = vmatprep.mubr.f32.mxu1 %v2085_v16 }
 0x1e5   : > { %v1810_v18 = vpop.f32.mrb[26].mxu0  ;;  %1883 = vmatmul.mubr.f32.gmra.mrb[22].mxu1 %v2087_v17 }
 0x1e6   : > { %v1059_v19 = vadd.f32 %v1810_v18, %v2488_v3  ;;  %v1053_v20 = vpop.f32.mrb[27].mxu0 }
 0x1e7   : > { %v1054_v21 = vadd.f32 %v2488_v3, %v1053_v20 }
 0x1e9   : > { %2092 = vtanh.f32 %v1054_v21 }
 0x1ea   : > { %2094 = vtanh.f32 %v1059_v19 }
 0x1eb   : > { %v2089_v22 = vpop.eup %2088 }
 0x1ec   : > { %v2091_v23 = vpop.eup %2090  ;;  %1885 = vmatprep.mubr.f32.mxu1 %v2089_v22 }
 0x1ed   : > { %v1813_v24 = vpop.f32.mrb[28].mxu0  ;;  %1886 = vmatmul.mubr.f32.gmra.mrb[24].mxu1 %v2091_v23 }
 0x1ee   : > { %v1069_v25 = vadd.f32 %v1813_v24, %v2488_v3  ;;  %v1063_v26 = vpop.f32.mrb[29].mxu0 }
 0x1ef   : > { %v1064_v27 = vadd.f32 %v2488_v3, %v1063_v26 }
 0x1f1   : > { %2096 = vtanh.f32 %v1064_v27 }
 0x1f2   : > { %2098 = vtanh.f32 %v1069_v25 }
 0x1f3   : > { %v2093_v28 = vpop.eup %2092 }
 0x1f4   : > { %v2095_v29 = vpop.eup %2094  ;;  %1888 = vmatprep.mubr.f32.mxu1 %v2093_v28 }
 0x1f5   : > { %v1816_v30 = vpop.f32.mrb[30].mxu0  ;;  %1889 = vmatmul.mubr.f32.gmra.mrb[26].mxu1 %v2095_v29 }
 0x1f6   : > { %v1079_v31 = vadd.f32 %v1816_v30, %v2488_v3  ;;  %v1073_v32 = vpop.f32.mrb[31].mxu0 }
 0x1f7   : > { %v1074_v33 = vadd.f32 %v2488_v3, %v1073_v32 }
 0x1f9   : > { %2100 = vtanh.f32 %v1074_v33 }
 0x1fa   : > { %2102 = vtanh.f32 %v1079_v31 }
 0x1fb   : > { %v2097_v34 = vpop.eup %2096 }
 0x1fc   : > { %v2099_v35 = vpop.eup %2098  ;;  %1891 = vmatprep.mubr.f32.mxu1 %v2097_v34 }
 0x1fd   : > { %1892 = vmatmul.mubr.f32.gmra.mrb[28].mxu1 %v2099_v35 }
 0x203   : > { %v2101_v36 = vpop.eup %2100 }
 0x204   : > { %v2103_v37 = vpop.eup %2102  ;;  %1894 = vmatprep.mubr.f32.mxu1 %v2101_v36 }
 0x205   : > { %1895 = vmatmul.mubr.f32.gmra.mrb[30].mxu1 %v2103_v37 }
 0x261   : > { %v1851_v39 = vpop.f32.mrb[0].mxu1 }
 0x262   : > { %v1209_v40 = vadd.f32 %v1851_v39, %v2525_v38  ;;  %v1203_v41 = vpop.f32.mrb[1].mxu1 }
 0x263   : > { %v1204_v3 = vadd.f32 %v2525_v38, %v1203_v41 }
 0x264   : > { %2104 = vtanh.f32 %v1209_v40 }
 0x265   : > { %2106 = vtanh.f32 %v1204_v3 }
 0x268   : > { %v1854_v42 = vpop.f32.mrb[2].mxu1 }
 0x269   : > { %v1219_v43 = vadd.f32 %v1854_v42, %v2525_v38  ;;  %v1213_v44 = vpop.f32.mrb[3].mxu1 }
 0x26a   : > { %v1214_v45 = vadd.f32 %v2525_v38, %v1213_v44 }
 0x26b   : > { %2108 = vtanh.f32 %v1219_v43 }
 0x26c   : > { %2110 = vtanh.f32 %v1214_v45 }
 0x26e   : > { %v2105_v47 = vpop.eup %2104 }
 0x26f   : > { %v2107_v48 = vpop.eup %2106  ;;  %v1403_v49 = vmul.f32 %v2105_v47, %v2534_v46 }
 0x270   : > { %v1857_v50 = vpop.f32.mrb[4].mxu1  ;;  %v1402_v51 = vmul.f32 %v2107_v48, %v2534_v46 }
 0x271   : > { %1436 = vadd.xlane.f32.xlu0 %v1403_v49  ;;  %v1229_v52 = vadd.f32 %v1857_v50, %v2525_v38  ;;  %v1223_v53 = vpop.f32.mrb[5].mxu1 }
 0x272   : > { %1434 = vadd.xlane.f32.xlu1 %v1402_v51  ;;  %v1224_v54 = vadd.f32 %v2525_v38, %v1223_v53 }
 0x273   : > { %2112 = vtanh.f32 %v1229_v52 }
 0x274   : > { %2114 = vtanh.f32 %v1224_v54 }
 0x275   : > { %v2109_v55 = vpop.eup %2108 }
 0x276   : > { %v2111_v56 = vpop.eup %2110  ;;  %v1405_v57 = vmul.f32 %v2109_v55, %v2534_v46 }
 0x277   : > { %v1404_v58 = vmul.f32 %v2111_v56, %v2534_v46 }
 0x278   : > { %1440 = vadd.xlane.f32.xlu1 %v1405_v57  ;;  %v1860_v59 = vpop.f32.mrb[6].mxu1 }
 0x279   : > { %v1239_v60 = vadd.f32 %v1860_v59, %v2525_v38  ;;  %1438 = vadd.xlane.f32.xlu0 %v1404_v58  ;;  %v1233_v61 = vpop.f32.mrb[7].mxu1 }
 0x27a   : > { %v1234_v62 = vadd.f32 %v2525_v38, %v1233_v61 }
 0x27b   : > { %2116 = vtanh.f32 %v1239_v60 }
 0x27c   : > { %2118 = vtanh.f32 %v1234_v62 }
 0x27d   : > { %v2113_v63 = vpop.eup %2112 }
 0x27e   : > { %v2115_v0 = vpop.eup %2114  ;;  %v1407_v1 = vmul.f32 %v2113_v63, %v2534_v46 }
 0x27f   : > { %v1406_v4 = vmul.f32 %v2115_v0, %v2534_v46 }
 0x280   : > { %1444 = vadd.xlane.f32.xlu1 %v1407_v1  ;;  %v1863_v5 = vpop.f32.mrb[8].mxu1 }
 0x281   : > { %v1249_v2 = vadd.f32 %v1863_v5, %v2525_v38  ;;  %1442 = vadd.xlane.f32.xlu0 %v1406_v4  ;;  %v1243_v6 = vpop.f32.mrb[9].mxu1 }
 0x282   : > { %v1244_v7 = vadd.f32 %v2525_v38, %v1243_v6 }
 0x283   : > { %2120 = vtanh.f32 %v1249_v2 }
 0x284   : > { %2122 = vtanh.f32 %v1244_v7 }
 0x285   : > { %v2117_v8 = vpop.eup %2116 }
 0x286   : > { %v2119_v10 = vpop.eup %2118  ;;  %v1409_v9 = vmul.f32 %v2117_v8, %v2534_v46 }
 0x287   : > { %v1408_v11 = vmul.f32 %v2119_v10, %v2534_v46 }
 0x288   : > { %1448 = vadd.xlane.f32.xlu1 %v1409_v9  ;;  %v1866_v12 = vpop.f32.mrb[10].mxu1 }
 0x289   : > { %v1259_v13 = vadd.f32 %v1866_v12, %v2525_v38  ;;  %1446 = vadd.xlane.f32.xlu0 %v1408_v11  ;;  %v1253_v14 = vpop.f32.mrb[11].mxu1 }
 0x28a   : > { %v1254_v15 = vadd.f32 %v2525_v38, %v1253_v14 }
 0x28b   : > { %2124 = vtanh.f32 %v1259_v13 }
 0x28c   : > { %2126 = vtanh.f32 %v1254_v15 }
 0x28d   : > { %v2121_v16 = vpop.eup %2120 }
 0x28e   : > { %v2123_v17 = vpop.eup %2122  ;;  %v1411_v18 = vmul.f32 %v2121_v16, %v2534_v46 }
 0x28f   : > { %v1410_v19 = vmul.f32 %v2123_v17, %v2534_v46 }
 0x290   : > { %1452 = vadd.xlane.f32.xlu1 %v1411_v18  ;;  %v1869_v20 = vpop.f32.mrb[12].mxu1 }
 0x291   : > { %v1269_v21 = vadd.f32 %v1869_v20, %v2525_v38  ;;  %1450 = vadd.xlane.f32.xlu0 %v1410_v19  ;;  %v1263_v22 = vpop.f32.mrb[13].mxu1 }
 0x292   : > { %v1264_v23 = vadd.f32 %v2525_v38, %v1263_v22 }
 0x293   : > { %2128 = vtanh.f32 %v1269_v21 }
 0x294   : > { %2130 = vtanh.f32 %v1264_v23 }
 0x295   : > { %v2125_v24 = vpop.eup %2124 }
 0x296   : > { %v2127_v25 = vpop.eup %2126  ;;  %v1413_v26 = vmul.f32 %v2125_v24, %v2534_v46 }
 0x297   : > { %v1412_v27 = vmul.f32 %v2127_v25, %v2534_v46 }
 0x298   : > { %1456 = vadd.xlane.f32.xlu1 %v1413_v26  ;;  %v1872_v28 = vpop.f32.mrb[14].mxu1 }
 0x299   : > { %v1279_v29 = vadd.f32 %v1872_v28, %v2525_v38  ;;  %1454 = vadd.xlane.f32.xlu0 %v1412_v27  ;;  %v1273_v30 = vpop.f32.mrb[15].mxu1 }
 0x29a   : > { %v1274_v31 = vadd.f32 %v2525_v38, %v1273_v30 }
 0x29b   : > { %2132 = vtanh.f32 %v1279_v29 }
 0x29c   : > { %2134 = vtanh.f32 %v1274_v31 }
 0x29d   : > { %v2129_v32 = vpop.eup %2128 }
 0x29e   : > { %v2131_v33 = vpop.eup %2130  ;;  %v1415_v34 = vmul.f32 %v2129_v32, %v2534_v46 }
 0x29f   : > { %v1414_v35 = vmul.f32 %v2131_v33, %v2534_v46 }
 0x2a0   : > { %1460 = vadd.xlane.f32.xlu1 %v1415_v34  ;;  %v1875_v36 = vpop.f32.mrb[16].mxu1 }
 0x2a1   : > { %v1289_v37 = vadd.f32 %v1875_v36, %v2525_v38  ;;  %1458 = vadd.xlane.f32.xlu0 %v1414_v35  ;;  %v1283_v39 = vpop.f32.mrb[17].mxu1 }
 0x2a2   : > { %v1284_v40 = vadd.f32 %v2525_v38, %v1283_v39 }
 0x2a3   : > { %2136 = vtanh.f32 %v1289_v37 }
 0x2a4   : > { %2138 = vtanh.f32 %v1284_v40 }
 0x2a5   : > { %v2133_v41 = vpop.eup %2132 }
 0x2a6   : > { %v2135_v3 = vpop.eup %2134  ;;  %v1417_v42 = vmul.f32 %v2133_v41, %v2534_v46 }
 0x2a7   : > { %v1416_v43 = vmul.f32 %v2135_v3, %v2534_v46 }
 0x2a8   : > { %1464 = vadd.xlane.f32.xlu1 %v1417_v42  ;;  %v1878_v44 = vpop.f32.mrb[18].mxu1 }
 0x2a9   : > { %v1299_v45 = vadd.f32 %v1878_v44, %v2525_v38  ;;  %1462 = vadd.xlane.f32.xlu0 %v1416_v43  ;;  %v1293_v47 = vpop.f32.mrb[19].mxu1 }
 0x2aa   : > { %v1294_v48 = vadd.f32 %v2525_v38, %v1293_v47 }
 0x2ab   : > { %2140 = vtanh.f32 %v1299_v45 }
 0x2ac   : > { %2142 = vtanh.f32 %v1294_v48 }
 0x2ad   : > { %v2137_v49 = vpop.eup %2136 }
 0x2ae   : > { %v2139_v50 = vpop.eup %2138  ;;  %v1419_v51 = vmul.f32 %v2137_v49, %v2534_v46 }
 0x2af   : > { %v1418_v52 = vmul.f32 %v2139_v50, %v2534_v46 }
 0x2b0   : > { %1468 = vadd.xlane.f32.xlu1 %v1419_v51  ;;  %v1881_v53 = vpop.f32.mrb[20].mxu1 }
 0x2b1   : > { %v1309_v54 = vadd.f32 %v1881_v53, %v2525_v38  ;;  %1466 = vadd.xlane.f32.xlu0 %v1418_v52  ;;  %v1303_v55 = vpop.f32.mrb[21].mxu1 }
 0x2b2   : > { %v1304_v56 = vadd.f32 %v2525_v38, %v1303_v55 }
 0x2b3   : > { %2144 = vtanh.f32 %v1309_v54 }
 0x2b4   : > { %2146 = vtanh.f32 %v1304_v56 }
 0x2b5   : > { %v2141_v57 = vpop.eup %2140 }
 0x2b6   : > { %v2143_v58 = vpop.eup %2142  ;;  %v1421_v59 = vmul.f32 %v2141_v57, %v2534_v46 }
 0x2b7   : > { %v1420_v60 = vmul.f32 %v2143_v58, %v2534_v46 }
 0x2b8   : > { %1472 = vadd.xlane.f32.xlu1 %v1421_v59  ;;  %v1884_v61 = vpop.f32.mrb[22].mxu1 }
 0x2b9   : > { %v1319_v62 = vadd.f32 %v1884_v61, %v2525_v38  ;;  %1470 = vadd.xlane.f32.xlu0 %v1420_v60  ;;  %v1313_v63 = vpop.f32.mrb[23].mxu1 }
 0x2ba   : > { %v1314_v0 = vadd.f32 %v2525_v38, %v1313_v63 }
 0x2bb   : > { %2148 = vtanh.f32 %v1319_v62 }
 0x2bc   : > { %2150 = vtanh.f32 %v1314_v0 }
 0x2bd   : > { %v2145_v1 = vpop.eup %2144 }
 0x2be   : > { %v2147_v4 = vpop.eup %2146  ;;  %v1423_v5 = vmul.f32 %v2145_v1, %v2534_v46 }
 0x2bf   : > { %v1422_v2 = vmul.f32 %v2147_v4, %v2534_v46 }
 0x2c0   : > { %1476 = vadd.xlane.f32.xlu1 %v1423_v5  ;;  %v1887_v6 = vpop.f32.mrb[24].mxu1 }
 0x2c1   : > { %v1329_v7 = vadd.f32 %v1887_v6, %v2525_v38  ;;  %1474 = vadd.xlane.f32.xlu0 %v1422_v2  ;;  %v1323_v8 = vpop.f32.mrb[25].mxu1 }
 0x2c2   : > { %v1324_v10 = vadd.f32 %v2525_v38, %v1323_v8 }
 0x2c3   : > { %2152 = vtanh.f32 %v1329_v7 }
 0x2c4   : > { %2154 = vtanh.f32 %v1324_v10 }
 0x2c5   : > { %v2149_v9 = vpop.eup %2148 }
 0x2c6   : > { %v2151_v11 = vpop.eup %2150  ;;  %v1425_v12 = vmul.f32 %v2149_v9, %v2534_v46 }
 0x2c7   : > { %v1424_v13 = vmul.f32 %v2151_v11, %v2534_v46 }
 0x2c8   : > { %1480 = vadd.xlane.f32.xlu1 %v1425_v12  ;;  %v1890_v14 = vpop.f32.mrb[26].mxu1 }
 0x2c9   : > { %v1339_v15 = vadd.f32 %v1890_v14, %v2525_v38  ;;  %1478 = vadd.xlane.f32.xlu0 %v1424_v13  ;;  %v1333_v16 = vpop.f32.mrb[27].mxu1 }
 0x2ca   : > { %v1334_v17 = vadd.f32 %v2525_v38, %v1333_v16 }
 0x2cb   : > { %2156 = vtanh.f32 %v1339_v15 }
 0x2cc   : > { %2158 = vtanh.f32 %v1334_v17 }
 0x2cd   : > { %v2153_v18 = vpop.eup %2152 }
 0x2ce   : > { %v2155_v19 = vpop.eup %2154  ;;  %v1427_v20 = vmul.f32 %v2153_v18, %v2534_v46 }
 0x2cf   : > { %v1426_v21 = vmul.f32 %v2155_v19, %v2534_v46 }
 0x2d0   : > { %1484 = vadd.xlane.f32.xlu1 %v1427_v20  ;;  %v1893_v22 = vpop.f32.mrb[28].mxu1 }
 0x2d1   : > { %v1349_v23 = vadd.f32 %v1893_v22, %v2525_v38  ;;  %1482 = vadd.xlane.f32.xlu0 %v1426_v21  ;;  %v1343_v24 = vpop.f32.mrb[29].mxu1 }
 0x2d2   : > { %v1344_v25 = vadd.f32 %v2525_v38, %v1343_v24 }
 0x2d3   : > { %2160 = vtanh.f32 %v1349_v23 }
 0x2d4   : > { %2162 = vtanh.f32 %v1344_v25 }
 0x2d5   : > { %v2157_v26 = vpop.eup %2156 }
 0x2d6   : > { %v2159_v27 = vpop.eup %2158  ;;  %v1429_v28 = vmul.f32 %v2157_v26, %v2534_v46 }
 0x2d7   : > { %v1428_v29 = vmul.f32 %v2159_v27, %v2534_v46 }
 0x2d8   : > { %1488 = vadd.xlane.f32.xlu1 %v1429_v28  ;;  %v1896_v30 = vpop.f32.mrb[30].mxu1 }
 0x2d9   : > { %v1359_v31 = vadd.f32 %v1896_v30, %v2525_v38  ;;  %1486 = vadd.xlane.f32.xlu0 %v1428_v29  ;;  %v1353_v32 = vpop.f32.mrb[31].mxu1 }
 0x2da   : > { %v1354_v33 = vadd.f32 %v2525_v38, %v1353_v32  ;;  %v2596_v38 = vld [vmem:[#allocation2] ss:$0 sm:$0xff] }
 0x2db   : > { %2164 = vtanh.f32 %v1359_v31 }
 0x2dc   : > { %2166 = vtanh.f32 %v1354_v33 }
 0x2dd   : > { %v2161_v34 = vpop.eup %2160 }
 0x2de   : > { %v2163_v35 = vpop.eup %2162  ;;  %v1431_v36 = vmul.f32 %v2161_v34, %v2534_v46 }
 0x2df   : > { %v1430_v37 = vmul.f32 %v2163_v35, %v2534_v46 }
 0x2e0   : > { %1492 = vadd.xlane.f32.xlu1 %v1431_v36 }
 0x2e1   : > { %1490 = vadd.xlane.f32.xlu0 %v1430_v37 }
 0x2e5   : > { %v2165_v39 = vpop.eup %2164 }
 0x2e6   : > { %v2167_v40 = vpop.eup %2166  ;;  %v1433_v41 = vmul.f32 %v2165_v39, %v2534_v46 }
 0x2e7   : > { %v1432_v3 = vmul.f32 %v2167_v40, %v2534_v46 }
 0x2e8   : > { %1496 = vadd.xlane.f32.xlu1 %v1433_v41 }
 0x2e9   : > { %1494 = vadd.xlane.f32.xlu0 %v1432_v3 }
 0x2fe   : > { %v1437_v42 = vpop.xlane.xlu0 %1436 }
 0x2ff   : > { %v1505_v43 = vadd.f32 %v2596_v38, %v1437_v42  ;;  %v1435_v46 = vpop.xlane.xlu1 %1434 }
 0x300   : > { %v1504_v44 = vadd.f32 %v2596_v38, %v1435_v46 }
 0x301   : > { %1538 = vst.msk [vmem:[%s2603_s16 + $0x8] sm:$0xff] %vm1536_vm0, %v1505_v43 }
 0x302   : > { %1537 = vst.msk [vmem:[%s2603_s16] sm:$0xff] %vm1536_vm0, %v1504_v44 }
 0x305   : > { %v1441_v45 = vpop.xlane.xlu1 %1440 }
 0x306   : > { %v1507_v47 = vadd.f32 %v2596_v38, %v1441_v45  ;;  %v1439_v48 = vpop.xlane.xlu0 %1438 }
 0x307   : > { %v1506_v49 = vadd.f32 %v2596_v38, %v1439_v48 }
 0x308   : > { %1540 = vst.msk [vmem:[%s2603_s16 + $0x18] sm:$0xff] %vm1536_vm0, %v1507_v47 }
 0x309   : > { %1539 = vst.msk [vmem:[%s2603_s16 + $0x10] sm:$0xff] %vm1536_vm0, %v1506_v49 }
 0x30d   : > { %v1445_v50 = vpop.xlane.xlu1 %1444 }
 0x30e   : > { %v1509_v51 = vadd.f32 %v2596_v38, %v1445_v50  ;;  %v1443_v52 = vpop.xlane.xlu0 %1442 }
 0x30f   : > { %v1508_v53 = vadd.f32 %v2596_v38, %v1443_v52 }
 0x310   : > { %1542 = vst.msk [vmem:[%s2603_s16 + $0x28] sm:$0xff] %vm1536_vm0, %v1509_v51 }
 0x311   : > { %1541 = vst.msk [vmem:[%s2603_s16 + $0x20] sm:$0xff] %vm1536_vm0, %v1508_v53 }
 0x315   : > { %v1449_v54 = vpop.xlane.xlu1 %1448 }
 0x316   : > { %v1511_v55 = vadd.f32 %v2596_v38, %v1449_v54  ;;  %v1447_v56 = vpop.xlane.xlu0 %1446 }
 0x317   : > { %v1510_v57 = vadd.f32 %v2596_v38, %v1447_v56 }
 0x318   : > { %1544 = vst.msk [vmem:[%s2603_s16 + $0x38] sm:$0xff] %vm1536_vm0, %v1511_v55 }
 0x319   : > { %1543 = vst.msk [vmem:[%s2603_s16 + $0x30] sm:$0xff] %vm1536_vm0, %v1510_v57 }
 0x31d   : > { %v1453_v58 = vpop.xlane.xlu1 %1452 }
 0x31e   : > { %v1513_v59 = vadd.f32 %v2596_v38, %v1453_v58  ;;  %v1451_v60 = vpop.xlane.xlu0 %1450 }
 0x31f   : > { %v1512_v61 = vadd.f32 %v2596_v38, %v1451_v60 }
 0x320   : > { %1546 = vst.msk [vmem:[%s2603_s16 + $0x48] sm:$0xff] %vm1536_vm0, %v1513_v59 }
 0x321   : > { %1545 = vst.msk [vmem:[%s2603_s16 + $0x40] sm:$0xff] %vm1536_vm0, %v1512_v61 }
 0x325   : > { %v1457_v62 = vpop.xlane.xlu1 %1456 }
 0x326   : > { %v1515_v63 = vadd.f32 %v2596_v38, %v1457_v62  ;;  %v1455_v0 = vpop.xlane.xlu0 %1454 }
 0x327   : > { %v1514_v1 = vadd.f32 %v2596_v38, %v1455_v0 }
 0x328   : > { %1548 = vst.msk [vmem:[%s2603_s16 + $0x58] sm:$0xff] %vm1536_vm0, %v1515_v63 }
 0x329   : > { %1547 = vst.msk [vmem:[%s2603_s16 + $0x50] sm:$0xff] %vm1536_vm0, %v1514_v1 }
 0x32d   : > { %v1461_v4 = vpop.xlane.xlu1 %1460 }
 0x32e   : > { %v1517_v5 = vadd.f32 %v2596_v38, %v1461_v4  ;;  %v1459_v2 = vpop.xlane.xlu0 %1458 }
 0x32f   : > { %v1516_v6 = vadd.f32 %v2596_v38, %v1459_v2 }
 0x330   : > { %1550 = vst.msk [vmem:[%s2603_s16 + $0x68] sm:$0xff] %vm1536_vm0, %v1517_v5 }
 0x331   : > { %1549 = vst.msk [vmem:[%s2603_s16 + $0x60] sm:$0xff] %vm1536_vm0, %v1516_v6 }
 0x335   : > { %v1465_v7 = vpop.xlane.xlu1 %1464 }
 0x336   : > { %v1519_v8 = vadd.f32 %v2596_v38, %v1465_v7  ;;  %v1463_v10 = vpop.xlane.xlu0 %1462 }
 0x337   : > { %v1518_v9 = vadd.f32 %v2596_v38, %v1463_v10 }
 0x338   : > { %1552 = vst.msk [vmem:[%s2603_s16 + $0x78] sm:$0xff] %vm1536_vm0, %v1519_v8 }
 0x339   : > { %1551 = vst.msk [vmem:[%s2603_s16 + $0x70] sm:$0xff] %vm1536_vm0, %v1518_v9 }
 0x33d   : > { %v1469_v11 = vpop.xlane.xlu1 %1468 }
 0x33e   : > { %v1521_v12 = vadd.f32 %v2596_v38, %v1469_v11  ;;  %v1467_v13 = vpop.xlane.xlu0 %1466 }
 0x33f   : > { %v1520_v14 = vadd.f32 %v2596_v38, %v1467_v13 }
 0x340   : > { %1554 = vst.msk [vmem:[%s2603_s16 + $0x88] sm:$0xff] %vm1536_vm0, %v1521_v12 }
 0x341   : > { %1553 = vst.msk [vmem:[%s2603_s16 + $0x80] sm:$0xff] %vm1536_vm0, %v1520_v14 }
 0x345   : > { %v1473_v15 = vpop.xlane.xlu1 %1472 }
 0x346   : > { %v1523_v16 = vadd.f32 %v2596_v38, %v1473_v15  ;;  %v1471_v17 = vpop.xlane.xlu0 %1470 }
 0x347   : > { %v1522_v18 = vadd.f32 %v2596_v38, %v1471_v17 }
 0x348   : > { %1556 = vst.msk [vmem:[%s2603_s16 + $0x98] sm:$0xff] %vm1536_vm0, %v1523_v16 }
 0x349   : > { %1555 = vst.msk [vmem:[%s2603_s16 + $0x90] sm:$0xff] %vm1536_vm0, %v1522_v18 }
 0x34d   : > { %v1477_v19 = vpop.xlane.xlu1 %1476 }
 0x34e   : > { %v1525_v20 = vadd.f32 %v2596_v38, %v1477_v19  ;;  %v1475_v21 = vpop.xlane.xlu0 %1474 }
 0x34f   : > { %v1524_v22 = vadd.f32 %v2596_v38, %v1475_v21 }
 0x350   : > { %1558 = vst.msk [vmem:[%s2603_s16 + $0xa8] sm:$0xff] %vm1536_vm0, %v1525_v20 }
 0x351   : > { %1557 = vst.msk [vmem:[%s2603_s16 + $0xa0] sm:$0xff] %vm1536_vm0, %v1524_v22 }
 0x355   : > { %v1481_v23 = vpop.xlane.xlu1 %1480 }
 0x356   : > { %v1527_v24 = vadd.f32 %v2596_v38, %v1481_v23  ;;  %v1479_v25 = vpop.xlane.xlu0 %1478 }
 0x357   : > { %v1526_v26 = vadd.f32 %v2596_v38, %v1479_v25 }
 0x358   : > { %1560 = vst.msk [vmem:[%s2603_s16 + $0xb8] sm:$0xff] %vm1536_vm0, %v1527_v24 }
 0x359   : > { %1559 = vst.msk [vmem:[%s2603_s16 + $0xb0] sm:$0xff] %vm1536_vm0, %v1526_v26 }
 0x35d   : > { %v1485_v27 = vpop.xlane.xlu1 %1484 }
 0x35e   : > { %v1529_v28 = vadd.f32 %v2596_v38, %v1485_v27  ;;  %v1483_v29 = vpop.xlane.xlu0 %1482 }
 0x35f   : > { %v1528_v30 = vadd.f32 %v2596_v38, %v1483_v29 }
 0x360   : > { %1562 = vst.msk [vmem:[%s2603_s16 + $0xc8] sm:$0xff] %vm1536_vm0, %v1529_v28 }
 0x361   : > { %1561 = vst.msk [vmem:[%s2603_s16 + $0xc0] sm:$0xff] %vm1536_vm0, %v1528_v30 }
 0x365   : > { %v1489_v31 = vpop.xlane.xlu1 %1488 }
 0x366   : > { %v1531_v32 = vadd.f32 %v2596_v38, %v1489_v31  ;;  %v1487_v33 = vpop.xlane.xlu0 %1486 }
 0x367   : > { %v1530_v34 = vadd.f32 %v2596_v38, %v1487_v33 }
 0x368   : > { %1564 = vst.msk [vmem:[%s2603_s16 + $0xd8] sm:$0xff] %vm1536_vm0, %v1531_v32 }
 0x369   : > { %1563 = vst.msk [vmem:[%s2603_s16 + $0xd0] sm:$0xff] %vm1536_vm0, %v1530_v34 }
 0x36d   : > { %v1493_v35 = vpop.xlane.xlu1 %1492 }
 0x36e   : > { %v1533_v36 = vadd.f32 %v2596_v38, %v1493_v35  ;;  %v1491_v37 = vpop.xlane.xlu0 %1490 }
 0x36f   : > { %v1532_v39 = vadd.f32 %v2596_v38, %v1491_v37 }
 0x370   : > { %1566 = vst.msk [vmem:[%s2603_s16 + $0xe8] sm:$0xff] %vm1536_vm0, %v1533_v36 }
 0x371   : > { %1565 = vst.msk [vmem:[%s2603_s16 + $0xe0] sm:$0xff] %vm1536_vm0, %v1532_v39 }
 0x375   : > { %v1497_v40 = vpop.xlane.xlu1 %1496 }
 0x376   : > { %v1535_v41 = vadd.f32 %v2596_v38, %v1497_v40  ;;  %v1495_v3 = vpop.xlane.xlu0 %1494 }
 0x377   : > { %v1534_v42 = vadd.f32 %v2596_v38, %v1495_v3 }
 0x378   : > { %1568 = vst.msk [vmem:[%s2603_s16 + $0xf8] sm:$0xff] %vm1536_vm0, %v1535_v41 }
 0x379   : > { %1567 = vst.msk [vmem:[%s2603_s16 + $0xf0] sm:$0xff] %vm1536_vm0, %v1534_v42 }
 0x37a PF: > { %s21_s11 = sadd.s32 1, %s2174_s11  }
 0x37b   : > { %p18_p4 = scmp.ge.s32.totalorder %s21_s11, 4  }
 0x37d   :  { %20 = sbr.rel (!%p18_p4) target bundleno = 3 (0x3), region = 86 }

</bundles_post_ra>
